<compile_context>
chip_gen: v7x
topology: tpu7x:2x2x1
jax: 0.10.0
libtpu: 0.0.40
codegen_flags: <defaults>
</compile_context>

<pallas_src>
import functools

import jax
import jax.numpy as jnp
from jax.experimental import pallas as pl
from jax.experimental.pallas import tpu as pltpu


# ---------------------------------------------------------------------------
# Kernel
# ---------------------------------------------------------------------------
def _concat_svm_kernel(w_ref, w1_ref, w2_ref, feat_ref, out_ref, *,
                       inv_dim, approx_recip, relayout_in_kernel, head_chunk):
    """Score one batch tile.

    w_ref   : SMEM f32[28] = [lin(6) | symmetrized-quad lower-tri(21) | bias(1)]
              (use_* flags already folded in by the wrapper).
    w1_ref  : VMEM [tile_b, D] (relayout_in_kernel) or [D, tile_b] word1 emb.
    w2_ref  : VMEM word2 embeddings, same layout.
    feat_ref: VMEM feature embeddings, same layout.
    out_ref : VMEM f32[1, tile_b] scores (lane-dense: batch on the lane axis).
    """

    def load(ref):
        x = ref[...].astype(jnp.float32)        # upcast AFTER the DMA (bf16 ok)
        # Relayout so batch sits on the 128-lane axis: the nine D-reductions
        # become cheap sublane folds and the whole head is lane-dense.  The
        # transpose runs on the XLU, which is otherwise idle in this kernel.
        return x.T if relayout_in_kernel else x            # -> [D, tile_b]

    a = load(w1_ref)
    b = load(w2_ref)
    c = load(feat_ref)

    def colsum(x):                              # [D, tile_b] -> [1, tile_b]
        return jnp.sum(x, axis=0, keepdims=True)

    # CSE'd dot products / squared norms (each computed exactly once and
    # shared by the three cosines / three L1 distances).
    aa = colsum(a * a)
    bb = colsum(b * b)
    cc = colsum(c * c)
    ac = colsum(a * c)
    bc = colsum(b * c)
    ab = colsum(a * b)
    l1_ac = colsum(jnp.abs(a - c))
    l1_bc = colsum(jnp.abs(b - c))
    l1_ab = colsum(jnp.abs(a - b))

    # Hoist the 28 SMEM scalar reads out of the chunk loop.
    w = [w_ref[i] for i in range(28)]

    def cosine(num, nx, ny):
        # Module formula: sum(x*y) / (||x|| * ||y|| + 1e-6).
        return num * pl.reciprocal(nx * ny + 1e-6, approx=approx_recip)

    # Evaluate the head in <=head_chunk lane slices so the six feature rows
    # plus temporaries stay within the 64-vreg file even for very wide tiles.
    tile_b = out_ref.shape[-1]
    for c0 in range(0, tile_b, head_chunk):
        sl = slice(c0, c0 + head_chunk)
        na = jnp.sqrt(aa[:, sl])
        nb = jnp.sqrt(bb[:, sl])
        nc = jnp.sqrt(cc[:, sl])
        f = (
            cosine(ac[:, sl], na, nc),    # cs_word1_feat
            cosine(bc[:, sl], nb, nc),    # cs_word2_feat
            cosine(ab[:, sl], na, nb),    # cs_word1_word2
            l1_ac[:, sl] * inv_dim,       # l1_word1_feat  / embedding_dim
            l1_bc[:, sl] * inv_dim,       # l1_word2_feat  / embedding_dim
            l1_ab[:, sl] * inv_dim,       # l1_word1_word2 / embedding_dim
        )
        # Factored linear + symmetric-quadratic head:
        #   score = bias + sum_i f_i * (w_lin[i] + sum_{j<=i} q_sym[i,j] * f_j)
        score = jnp.zeros_like(f[0]) + w[27]                # bias
        k = 6
        for i in range(6):
            inner = f[0] * w[k]
            k += 1
            for j in range(1, i + 1):
                inner = inner + f[j] * w[k]
                k += 1
            score = score + f[i] * (inner + w[i])
        out_ref[:, sl] = score.astype(out_ref.dtype)


# ---------------------------------------------------------------------------
# Wrapper helpers
# ---------------------------------------------------------------------------
def _pack_head_weights(mlp_weights, use_lin, use_quad):
    """Fold use_* flags and symmetrize the 6x6 quadratic -> f32[28]."""
    w = mlp_weights.astype(jnp.float32)
    lin = use_lin * w[0:6]
    q = use_quad * w[6:42].reshape(6, 6)
    # Coefficient of f_i*f_j (j < i) is q_ij + q_ji; the diagonal stays q_ii.
    sym = q + q.T - jnp.diag(jnp.diag(q))
    tri = sym[jnp.tril_indices(6)]   # row-major: (0,0),(1,0),(1,1),(2,0),...
    return jnp.concatenate([lin, tri, w[42:43]])


def _round_up(x, m):
    return -(-x // m) * m


def _vmem_capacity_bytes():
    try:
        return int(pltpu.get_tpu_info().vmem_capacity_bytes)
    except Exception:
        return 64 * 1024 * 1024            # conservative: v7x per-core VMEM


_TILE_CANDIDATES = (8192, 4096, 2048, 1024, 512, 256, 128)
_STEP_OVERHEAD_S = 0.35e-6                 # measured per-grid-step overhead
_HBM_BW = 1.0e12                           # rough B/s; only used to rank tiles


def _choose_tile_b(batch, dim, in_itemsize, vmem_cap):
    """Batch tile minimizing est. time = steps*overhead + padded_bytes/BW,
    under a generation-aware VMEM budget, with >=2 tiles for megacore/v7x."""
    n_buf = 2                               # default double buffering

    def inflight_bytes(tile):
        # 3 pipelined inputs (n_buf deep) + ~6 f32 blocks of in-kernel
        # temporaries (transposed copies / live products before reduction).
        return tile * dim * (3 * n_buf * in_itemsize + 6 * 4)

    budget = int(0.45 * vmem_cap)
    # Keep >=2 batch tiles so the "parallel" axis splits over v7x's two TCs
    # (on single-core chips the extra grid step costs ~0.35us -> negligible).
    cap = _round_up(-(-batch // 2), 128) if batch > 128 else 128

    best_tile, best_t = None, None
    for tile in _TILE_CANDIDATES:
        if tile > cap or inflight_bytes(tile) > budget:
            continue
        n_tiles = -(-batch // tile)
        est = (n_tiles * _STEP_OVERHEAD_S
               + n_tiles * tile * dim * 3 * in_itemsize / _HBM_BW)
        if best_t is None or est < best_t:
            best_tile, best_t = tile, est
    if best_tile is None:
        # Even a 128-row tile exceeds the VMEM budget (very large embedding
        # dim).  TODO(synk): add a D grid axis + accumulator for that regime.
        best_tile = 128
    return best_tile


# ---------------------------------------------------------------------------
# Forward
# ---------------------------------------------------------------------------
def concat_svm_forward(word1_emb, word2_emb, feature_emb, mlp_weights, *,
                       use_distance_linear_feats=1.0,
                       use_distance_quadratic_feats=1.0,
                       approx_reciprocal=False,
                       relayout_in_kernel=None):
    """Pallas-backed ConcatSVM.forward.  Returns float32 scores of shape [B].

    Embeddings may be f32 or bf16 (anything jnp upcasts to f32): the kernel
    casts after the DMA, so narrow inputs halve HBM traffic.
    relayout_in_kernel: None = try the on-chip transpose and fall back to the
    wrapper-transpose layout if Mosaic rejects it; True/False forces a path.
    """
    B, D = word1_emb.shape
    assert word2_emb.shape == (B, D) and feature_emb.shape == (B, D)
    assert mlp_weights.shape == (43,)

    w_packed = _pack_head_weights(mlp_weights,
                                  use_distance_linear_feats,
                                  use_distance_quadratic_feats)

    inputs = (word1_emb, word2_emb, feature_emb)
    b_work = B
    if B < 128:
        # Tiny batches: pad up to one (8,128)-friendly tile (cheap here, and
        # avoids a block shape larger than the array).
        inputs = tuple(jnp.pad(x, ((0, 128 - B), (0, 0))) for x in inputs)
        b_work = 128

    in_itemsize = word1_emb.dtype.itemsize
    vmem_cap = _vmem_capacity_bytes()
    tile_b = _choose_tile_b(b_work, D, in_itemsize, vmem_cap)
    num_tiles = -(-b_work // tile_b)
    b_pad = num_tiles * tile_b
    head_chunk = min(tile_b, 512)

    cost = pl.CostEstimate(
        flops=int(18 * b_work * D + 100 * b_work),
        transcendentals=int(6 * b_work),
        bytes_accessed=int(3 * b_work * D * in_itemsize + 4 * b_work + 4 * 28),
    )
    compiler_params = pltpu.CompilerParams(
        # v7x: the batch-tile axis is parallel -> sharded over both TCs.
        dimension_semantics=("parallel",),
        vmem_limit_bytes=int(0.9 * vmem_cap),
    )

    def run(in_kernel_relayout):
        kernel = functools.partial(
            _concat_svm_kernel,
            inv_dim=1.0 / float(D),
            approx_recip=approx_reciprocal,
            relayout_in_kernel=in_kernel_relayout,
            head_chunk=head_chunk)

        if in_kernel_relayout:
            # Natural [B, D] batch tiles; relayout happens on-chip, so no
            # extra HBM pass.  A partial trailing tile reads undefined rows,
            # which stay in their own lanes and are sliced off below.
            ops = inputs
            in_block, in_map = (tile_b, D), (lambda i: (i, 0))
        else:
            # Fallback layout pass in XLA (~3x the kernel's own HBM traffic);
            # only used if Mosaic can't transpose this block shape on-chip.
            def to_lanes(x):
                x_t = x.T                                   # [D, b_work]
                if b_pad != b_work:
                    x_t = jnp.pad(x_t, ((0, 0), (0, b_pad - b_work)))
                return x_t
            ops = tuple(to_lanes(x) for x in inputs)
            in_block, in_map = (D, tile_b), (lambda i: (0, i))

        out = pl.pallas_call(
            kernel,
            out_shape=jax.ShapeDtypeStruct((1, b_pad), jnp.float32),
            grid=(num_tiles,),
            in_specs=[pl.BlockSpec(memory_space=pltpu.MemorySpace.SMEM)]  # head weights
                    + [pl.BlockSpec(in_block, in_map)] * 3,               # w1, w2, feat
            out_specs=pl.BlockSpec((1, tile_b), lambda i: (0, i)),        # lane-dense scores
            compiler_params=compiler_params,
            cost_estimate=cost,
        )(w_packed, *ops)
        return out[0, :B]

    if relayout_in_kernel is None:
        try:
            return run(True)
        except Exception:
            # Mosaic rejected the on-chip transpose for this shape; degrade
            # gracefully to the wrapper-transpose layout (correct, slower).
            return run(False)
    return run(relayout_in_kernel)


# ---------------------------------------------------------------------------
# Pure-JAX reference + self-test
# ---------------------------------------------------------------------------
def _reference_forward(w1, w2, f, w, use_lin=1.0, use_quad=1.0):
    """Pure-JAX reference mirroring the torch forward exactly."""
    D = w1.shape[1]

    def cos(a, b):
        an = jnp.linalg.norm(a, axis=1, keepdims=True)
        bn = jnp.linalg.norm(b, axis=1, keepdims=True)
        return jnp.sum(a * b, axis=1, keepdims=True) / (an * bn + 1e-6)

    def l1(x):
        return jnp.sum(jnp.abs(x), axis=1, keepdims=True)

    dist = jnp.concatenate(
        [cos(w1, f), cos(w2, f), cos(w1, w2),
         l1(w1 - f) / D, l1(w2 - f) / D, l1(w1 - w2) / D], axis=1)
    quad = (dist[:, None, :] * dist[:, :, None]).reshape(dist.shape[0], -1)
    x = jnp.concatenate([use_lin * dist, use_quad * quad], axis=1)
    return x @ w[:42] + w[42]


if __name__ == "__main__":
    base_key = jax.random.PRNGKey(0)

    def _make(batch, dim, tag, dtype=jnp.float32):
        k1, k2, k3, k4 = jax.random.split(jax.random.fold_in(base_key, tag), 4)
        word1 = jax.random.normal(k1, (batch, dim), dtype=jnp.float32).astype(dtype)
        word2 = jax.random.normal(k2, (batch, dim), dtype=jnp.float32).astype(dtype)
        feat = jax.random.normal(k3, (batch, dim), dtype=jnp.float32).astype(dtype)
        # Deterministic Linear(42 -> 1) parameters: 42 weights + 1 bias.
        mlp_w = 0.1 * jax.random.normal(k4, (43,), dtype=jnp.float32)
        return word1, word2, feat, mlp_w

    def _check(batch, dim, tag, dtype=jnp.float32, tol=1e-3, **kwargs):
        word1, word2, feat, mlp_w = _make(batch, dim, tag, dtype)
        score = jax.block_until_ready(
            concat_svm_forward(word1, word2, feat, mlp_w, **kwargs))
        ref = _reference_forward(word1.astype(jnp.float32),
                                 word2.astype(jnp.float32),
                                 feat.astype(jnp.float32), mlp_w)
        assert score.shape == (batch,)
        assert jnp.allclose(score, ref, atol=tol, rtol=tol), (score, ref)

    # Tiny configuration consistent with the module (pads batch to one tile).
    _check(batch=8, dim=32, tag=0)
    # Multi-tile grid with a partial trailing batch tile (no wrapper padding).
    _check(batch=1100, dim=64, tag=1)
    # bf16 embeddings end-to-end (half the HBM traffic; math stays f32).
    _check(batch=1100, dim=64, tag=2, dtype=jnp.bfloat16)
    # EUP fast-reciprocal cosine path (looser tolerance, documented).
    _check(batch=512, dim=64, tag=3, tol=1e-2, approx_reciprocal=True)
    # Forced wrapper-relayout fallback path stays correct too.
    _check(batch=300, dim=32, tag=4, relayout_in_kernel=False)

    print("KERNEL_OK")
</pallas_src>

<mosaic_0001>
module attributes {stable_mosaic.version = 11 : i64} {
  func.func @_concat_svm_kernel(%arg0: i32, %arg1: memref<28xf32, #tpu.memory_space<smem>>, %arg2: memref<128x32xf32, #tpu.memory_space<vmem>>, %arg3: memref<128x32xf32, #tpu.memory_space<vmem>>, %arg4: memref<128x32xf32, #tpu.memory_space<vmem>>, %arg5: memref<1x128xf32, #tpu.memory_space<vmem>>) attributes {dimension_semantics = [#tpu.dimension_semantics<parallel>], iteration_bounds = array<i64: 1>, scalar_prefetch = 0 : i64, scratch_operands = 0 : i64, tpu.core_type = #tpu.core_type<tc>, window_params = [{transform_indices = @transform_0, window_bounds = array<i64: 28>}, {transform_indices = @transform_1, window_bounds = array<i64: 128, 32>}, {transform_indices = @transform_2, window_bounds = array<i64: 128, 32>}, {transform_indices = @transform_3, window_bounds = array<i64: 128, 32>}, {transform_indices = @transform_4, window_bounds = array<i64: 1, 128>}]} {
    %c0 = arith.constant 0 : index
    %c0_0 = arith.constant 0 : index
    %0 = vector.load %arg2[%c0, %c0_0] : memref<128x32xf32, #tpu.memory_space<vmem>>, vector<128x32xf32>
    %1 = tpu.transpose %0, [1, 0] : vector<128x32xf32> -> vector<32x128xf32>
    %c0_1 = arith.constant 0 : index
    %c0_2 = arith.constant 0 : index
    %2 = vector.load %arg3[%c0_1, %c0_2] : memref<128x32xf32, #tpu.memory_space<vmem>>, vector<128x32xf32>
    %3 = tpu.transpose %2, [1, 0] : vector<128x32xf32> -> vector<32x128xf32>
    %c0_3 = arith.constant 0 : index
    %c0_4 = arith.constant 0 : index
    %4 = vector.load %arg4[%c0_3, %c0_4] : memref<128x32xf32, #tpu.memory_space<vmem>>, vector<128x32xf32>
    %5 = tpu.transpose %4, [1, 0] : vector<128x32xf32> -> vector<32x128xf32>
    %6 = arith.mulf %1, %1 : vector<32x128xf32>
    %cst = arith.constant dense<0.000000e+00> : vector<128xf32>
    %7 = vector.multi_reduction <add>, %6, %cst [0] : vector<32x128xf32> to vector<128xf32>
    %8 = vector.shape_cast %7 : vector<128xf32> to vector<1x128xf32>
    %9 = arith.mulf %3, %3 : vector<32x128xf32>
    %cst_5 = arith.constant dense<0.000000e+00> : vector<128xf32>
    %10 = vector.multi_reduction <add>, %9, %cst_5 [0] : vector<32x128xf32> to vector<128xf32>
    %11 = vector.shape_cast %10 : vector<128xf32> to vector<1x128xf32>
    %12 = arith.mulf %5, %5 : vector<32x128xf32>
    %cst_6 = arith.constant dense<0.000000e+00> : vector<128xf32>
    %13 = vector.multi_reduction <add>, %12, %cst_6 [0] : vector<32x128xf32> to vector<128xf32>
    %14 = vector.shape_cast %13 : vector<128xf32> to vector<1x128xf32>
    %15 = arith.mulf %1, %5 : vector<32x128xf32>
    %cst_7 = arith.constant dense<0.000000e+00> : vector<128xf32>
    %16 = vector.multi_reduction <add>, %15, %cst_7 [0] : vector<32x128xf32> to vector<128xf32>
    %17 = vector.shape_cast %16 : vector<128xf32> to vector<1x128xf32>
    %18 = arith.mulf %3, %5 : vector<32x128xf32>
    %cst_8 = arith.constant dense<0.000000e+00> : vector<128xf32>
    %19 = vector.multi_reduction <add>, %18, %cst_8 [0] : vector<32x128xf32> to vector<128xf32>
    %20 = vector.shape_cast %19 : vector<128xf32> to vector<1x128xf32>
    %21 = arith.mulf %1, %3 : vector<32x128xf32>
    %cst_9 = arith.constant dense<0.000000e+00> : vector<128xf32>
    %22 = vector.multi_reduction <add>, %21, %cst_9 [0] : vector<32x128xf32> to vector<128xf32>
    %23 = vector.shape_cast %22 : vector<128xf32> to vector<1x128xf32>
    %24 = arith.subf %1, %5 : vector<32x128xf32>
    %25 = math.absf %24 : vector<32x128xf32>
    %cst_10 = arith.constant dense<0.000000e+00> : vector<128xf32>
    %26 = vector.multi_reduction <add>, %25, %cst_10 [0] : vector<32x128xf32> to vector<128xf32>
    %27 = vector.shape_cast %26 : vector<128xf32> to vector<1x128xf32>
    %28 = arith.subf %3, %5 : vector<32x128xf32>
    %29 = math.absf %28 : vector<32x128xf32>
    %cst_11 = arith.constant dense<0.000000e+00> : vector<128xf32>
    %30 = vector.multi_reduction <add>, %29, %cst_11 [0] : vector<32x128xf32> to vector<128xf32>
    %31 = vector.shape_cast %30 : vector<128xf32> to vector<1x128xf32>
    %32 = arith.subf %1, %3 : vector<32x128xf32>
    %33 = math.absf %32 : vector<32x128xf32>
    %cst_12 = arith.constant dense<0.000000e+00> : vector<128xf32>
    %34 = vector.multi_reduction <add>, %33, %cst_12 [0] : vector<32x128xf32> to vector<128xf32>
    %35 = vector.shape_cast %34 : vector<128xf32> to vector<1x128xf32>
    %c0_13 = arith.constant 0 : index
    %36 = memref.load %arg1[%c0_13] : memref<28xf32, #tpu.memory_space<smem>>
    %c1 = arith.constant 1 : index
    %37 = memref.load %arg1[%c1] : memref<28xf32, #tpu.memory_space<smem>>
    %c2 = arith.constant 2 : index
    %38 = memref.load %arg1[%c2] : memref<28xf32, #tpu.memory_space<smem>>
    %c3 = arith.constant 3 : index
    %39 = memref.load %arg1[%c3] : memref<28xf32, #tpu.memory_space<smem>>
    %c4 = arith.constant 4 : index
    %40 = memref.load %arg1[%c4] : memref<28xf32, #tpu.memory_space<smem>>
    %c5 = arith.constant 5 : index
    %41 = memref.load %arg1[%c5] : memref<28xf32, #tpu.memory_space<smem>>
    %c6 = arith.constant 6 : index
    %42 = memref.load %arg1[%c6] : memref<28xf32, #tpu.memory_space<smem>>
    %c7 = arith.constant 7 : index
    %43 = memref.load %arg1[%c7] : memref<28xf32, #tpu.memory_space<smem>>
    %c8 = arith.constant 8 : index
    %44 = memref.load %arg1[%c8] : memref<28xf32, #tpu.memory_space<smem>>
    %c9 = arith.constant 9 : index
    %45 = memref.load %arg1[%c9] : memref<28xf32, #tpu.memory_space<smem>>
    %c10 = arith.constant 10 : index
    %46 = memref.load %arg1[%c10] : memref<28xf32, #tpu.memory_space<smem>>
    %c11 = arith.constant 11 : index
    %47 = memref.load %arg1[%c11] : memref<28xf32, #tpu.memory_space<smem>>
    %c12 = arith.constant 12 : index
    %48 = memref.load %arg1[%c12] : memref<28xf32, #tpu.memory_space<smem>>
    %c13 = arith.constant 13 : index
    %49 = memref.load %arg1[%c13] : memref<28xf32, #tpu.memory_space<smem>>
    %c14 = arith.constant 14 : index
    %50 = memref.load %arg1[%c14] : memref<28xf32, #tpu.memory_space<smem>>
    %c15 = arith.constant 15 : index
    %51 = memref.load %arg1[%c15] : memref<28xf32, #tpu.memory_space<smem>>
    %c16 = arith.constant 16 : index
    %52 = memref.load %arg1[%c16] : memref<28xf32, #tpu.memory_space<smem>>
    %c17 = arith.constant 17 : index
    %53 = memref.load %arg1[%c17] : memref<28xf32, #tpu.memory_space<smem>>
    %c18 = arith.constant 18 : index
    %54 = memref.load %arg1[%c18] : memref<28xf32, #tpu.memory_space<smem>>
    %c19 = arith.constant 19 : index
    %55 = memref.load %arg1[%c19] : memref<28xf32, #tpu.memory_space<smem>>
    %c20 = arith.constant 20 : index
    %56 = memref.load %arg1[%c20] : memref<28xf32, #tpu.memory_space<smem>>
    %c21 = arith.constant 21 : index
    %57 = memref.load %arg1[%c21] : memref<28xf32, #tpu.memory_space<smem>>
    %c22 = arith.constant 22 : index
    %58 = memref.load %arg1[%c22] : memref<28xf32, #tpu.memory_space<smem>>
    %c23 = arith.constant 23 : index
    %59 = memref.load %arg1[%c23] : memref<28xf32, #tpu.memory_space<smem>>
    %c24 = arith.constant 24 : index
    %60 = memref.load %arg1[%c24] : memref<28xf32, #tpu.memory_space<smem>>
    %c25 = arith.constant 25 : index
    %61 = memref.load %arg1[%c25] : memref<28xf32, #tpu.memory_space<smem>>
    %c26 = arith.constant 26 : index
    %62 = memref.load %arg1[%c26] : memref<28xf32, #tpu.memory_space<smem>>
    %c27 = arith.constant 27 : index
    %63 = memref.load %arg1[%c27] : memref<28xf32, #tpu.memory_space<smem>>
    %64 = math.sqrt %8 : vector<1x128xf32>
    %65 = math.sqrt %11 : vector<1x128xf32>
    %66 = math.sqrt %14 : vector<1x128xf32>
    %67 = arith.mulf %64, %66 : vector<1x128xf32>
    %cst_14 = arith.constant 9.99999997E-7 : f32
    %68 = vector.broadcast %cst_14 : f32 to vector<1x128xf32>
    %69 = arith.addf %67, %68 : vector<1x128xf32>
    %70 = tpu.reciprocal %69 : vector<1x128xf32> -> vector<1x128xf32>
    %71 = arith.mulf %17, %70 : vector<1x128xf32>
    %72 = arith.mulf %65, %66 : vector<1x128xf32>
    %cst_15 = arith.constant 9.99999997E-7 : f32
    %73 = vector.broadcast %cst_15 : f32 to vector<1x128xf32>
    %74 = arith.addf %72, %73 : vector<1x128xf32>
    %75 = tpu.reciprocal %74 : vector<1x128xf32> -> vector<1x128xf32>
    %76 = arith.mulf %20, %75 : vector<1x128xf32>
    %77 = arith.mulf %64, %65 : vector<1x128xf32>
    %cst_16 = arith.constant 9.99999997E-7 : f32
    %78 = vector.broadcast %cst_16 : f32 to vector<1x128xf32>
    %79 = arith.addf %77, %78 : vector<1x128xf32>
    %80 = tpu.reciprocal %79 : vector<1x128xf32> -> vector<1x128xf32>
    %81 = arith.mulf %23, %80 : vector<1x128xf32>
    %cst_17 = arith.constant 3.125000e-02 : f32
    %82 = vector.broadcast %cst_17 : f32 to vector<1x128xf32>
    %83 = arith.mulf %27, %82 : vector<1x128xf32>
    %cst_18 = arith.constant 3.125000e-02 : f32
    %84 = vector.broadcast %cst_18 : f32 to vector<1x128xf32>
    %85 = arith.mulf %31, %84 : vector<1x128xf32>
    %cst_19 = arith.constant 3.125000e-02 : f32
    %86 = vector.broadcast %cst_19 : f32 to vector<1x128xf32>
    %87 = arith.mulf %35, %86 : vector<1x128xf32>
    %cst_20 = arith.constant 0.000000e+00 : f32
    %88 = vector.broadcast %cst_20 : f32 to vector<1x128xf32>
    %89 = vector.broadcast %63 : f32 to vector<1x128xf32>
    %90 = arith.addf %88, %89 : vector<1x128xf32>
    %91 = vector.broadcast %42 : f32 to vector<1x128xf32>
    %92 = arith.mulf %71, %91 : vector<1x128xf32>
    %93 = vector.broadcast %36 : f32 to vector<1x128xf32>
    %94 = arith.addf %92, %93 : vector<1x128xf32>
    %95 = arith.mulf %71, %94 : vector<1x128xf32>
    %96 = arith.addf %90, %95 : vector<1x128xf32>
    %97 = vector.broadcast %43 : f32 to vector<1x128xf32>
    %98 = arith.mulf %71, %97 : vector<1x128xf32>
    %99 = vector.broadcast %44 : f32 to vector<1x128xf32>
    %100 = arith.mulf %76, %99 : vector<1x128xf32>
    %101 = arith.addf %98, %100 : vector<1x128xf32>
    %102 = vector.broadcast %37 : f32 to vector<1x128xf32>
    %103 = arith.addf %101, %102 : vector<1x128xf32>
    %104 = arith.mulf %76, %103 : vector<1x128xf32>
    %105 = arith.addf %96, %104 : vector<1x128xf32>
    %106 = vector.broadcast %45 : f32 to vector<1x128xf32>
    %107 = arith.mulf %71, %106 : vector<1x128xf32>
    %108 = vector.broadcast %46 : f32 to vector<1x128xf32>
    %109 = arith.mulf %76, %108 : vector<1x128xf32>
    %110 = arith.addf %107, %109 : vector<1x128xf32>
    %111 = vector.broadcast %47 : f32 to vector<1x128xf32>
    %112 = arith.mulf %81, %111 : vector<1x128xf32>
    %113 = arith.addf %110, %112 : vector<1x128xf32>
    %114 = vector.broadcast %38 : f32 to vector<1x128xf32>
    %115 = arith.addf %113, %114 : vector<1x128xf32>
    %116 = arith.mulf %81, %115 : vector<1x128xf32>
    %117 = arith.addf %105, %116 : vector<1x128xf32>
    %118 = vector.broadcast %48 : f32 to vector<1x128xf32>
    %119 = arith.mulf %71, %118 : vector<1x128xf32>
    %120 = vector.broadcast %49 : f32 to vector<1x128xf32>
    %121 = arith.mulf %76, %120 : vector<1x128xf32>
    %122 = arith.addf %119, %121 : vector<1x128xf32>
    %123 = vector.broadcast %50 : f32 to vector<1x128xf32>
    %124 = arith.mulf %81, %123 : vector<1x128xf32>
    %125 = arith.addf %122, %124 : vector<1x128xf32>
    %126 = vector.broadcast %51 : f32 to vector<1x128xf32>
    %127 = arith.mulf %83, %126 : vector<1x128xf32>
    %128 = arith.addf %125, %127 : vector<1x128xf32>
    %129 = vector.broadcast %39 : f32 to vector<1x128xf32>
    %130 = arith.addf %128, %129 : vector<1x128xf32>
    %131 = arith.mulf %83, %130 : vector<1x128xf32>
    %132 = arith.addf %117, %131 : vector<1x128xf32>
    %133 = vector.broadcast %52 : f32 to vector<1x128xf32>
    %134 = arith.mulf %71, %133 : vector<1x128xf32>
    %135 = vector.broadcast %53 : f32 to vector<1x128xf32>
    %136 = arith.mulf %76, %135 : vector<1x128xf32>
    %137 = arith.addf %134, %136 : vector<1x128xf32>
    %138 = vector.broadcast %54 : f32 to vector<1x128xf32>
    %139 = arith.mulf %81, %138 : vector<1x128xf32>
    %140 = arith.addf %137, %139 : vector<1x128xf32>
    %141 = vector.broadcast %55 : f32 to vector<1x128xf32>
    %142 = arith.mulf %83, %141 : vector<1x128xf32>
    %143 = arith.addf %140, %142 : vector<1x128xf32>
    %144 = vector.broadcast %56 : f32 to vector<1x128xf32>
    %145 = arith.mulf %85, %144 : vector<1x128xf32>
    %146 = arith.addf %143, %145 : vector<1x128xf32>
    %147 = vector.broadcast %40 : f32 to vector<1x128xf32>
    %148 = arith.addf %146, %147 : vector<1x128xf32>
    %149 = arith.mulf %85, %148 : vector<1x128xf32>
    %150 = arith.addf %132, %149 : vector<1x128xf32>
    %151 = vector.broadcast %57 : f32 to vector<1x128xf32>
    %152 = arith.mulf %71, %151 : vector<1x128xf32>
    %153 = vector.broadcast %58 : f32 to vector<1x128xf32>
    %154 = arith.mulf %76, %153 : vector<1x128xf32>
    %155 = arith.addf %152, %154 : vector<1x128xf32>
    %156 = vector.broadcast %59 : f32 to vector<1x128xf32>
    %157 = arith.mulf %81, %156 : vector<1x128xf32>
    %158 = arith.addf %155, %157 : vector<1x128xf32>
    %159 = vector.broadcast %60 : f32 to vector<1x128xf32>
    %160 = arith.mulf %83, %159 : vector<1x128xf32>
    %161 = arith.addf %158, %160 : vector<1x128xf32>
    %162 = vector.broadcast %61 : f32 to vector<1x128xf32>
    %163 = arith.mulf %85, %162 : vector<1x128xf32>
    %164 = arith.addf %161, %163 : vector<1x128xf32>
    %165 = vector.broadcast %62 : f32 to vector<1x128xf32>
    %166 = arith.mulf %87, %165 : vector<1x128xf32>
    %167 = arith.addf %164, %166 : vector<1x128xf32>
    %168 = vector.broadcast %41 : f32 to vector<1x128xf32>
    %169 = arith.addf %167, %168 : vector<1x128xf32>
    %170 = arith.mulf %87, %169 : vector<1x128xf32>
    %171 = arith.addf %150, %170 : vector<1x128xf32>
    %c0_21 = arith.constant 0 : index
    %c0_22 = arith.constant 0 : index
    %172 = vector.load %arg5[%c0_21, %c0_22] : memref<1x128xf32, #tpu.memory_space<vmem>>, vector<1x128xf32>
    tpu.vector_store %arg5[%c0_21, %c0_22], %171 {strides = array<i32>} : memref<1x128xf32, #tpu.memory_space<vmem>>, vector<1x128xf32>,
    return
  }
  func.func @transform_0(%arg0: i32) -> i32 {
    %c0_i32 = arith.constant 0 : i32
    %c0_i32_0 = arith.constant 0 : i32
    return %c0_i32 : i32
  }
  func.func @transform_1(%arg0: i32) -> (i32, i32) {
    %c0_i32 = arith.constant 0 : i32
    %c0_i32_0 = arith.constant 0 : i32
    return %arg0, %c0_i32 : i32, i32
  }
  func.func @transform_2(%arg0: i32) -> (i32, i32) {
    %c0_i32 = arith.constant 0 : i32
    %c0_i32_0 = arith.constant 0 : i32
    return %arg0, %c0_i32 : i32, i32
  }
  func.func @transform_3(%arg0: i32) -> (i32, i32) {
    %c0_i32 = arith.constant 0 : i32
    %c0_i32_0 = arith.constant 0 : i32
    return %arg0, %c0_i32 : i32, i32
  }
  func.func @transform_4(%arg0: i32) -> (i32, i32) {
    %c0_i32 = arith.constant 0 : i32
    %c0_i32_0 = arith.constant 0 : i32
    return %c0_i32, %arg0 : i32, i32
  }
}

module attributes {stable_mosaic.version = 11 : i64} {
  func.func @_concat_svm_kernel(%arg0: i32, %arg1: memref<28xf32, #tpu.memory_space<smem>>, %arg2: memref<32x128xf32, #tpu.memory_space<vmem>>, %arg3: memref<32x128xf32, #tpu.memory_space<vmem>>, %arg4: memref<32x128xf32, #tpu.memory_space<vmem>>, %arg5: memref<1x128xf32, #tpu.memory_space<vmem>>) attributes {dimension_semantics = [#tpu.dimension_semantics<parallel>], iteration_bounds = array<i64: 1>, scalar_prefetch = 0 : i64, scratch_operands = 0 : i64, tpu.core_type = #tpu.core_type<tc>, window_params = [{transform_indices = @transform_0, window_bounds = array<i64: 28>}, {transform_indices = @transform_1, window_bounds = array<i64: 32, 128>}, {transform_indices = @transform_2, window_bounds = array<i64: 32, 128>}, {transform_indices = @transform_3, window_bounds = array<i64: 32, 128>}, {transform_indices = @transform_4, window_bounds = array<i64: 1, 128>}]} {
    %c0 = arith.constant 0 : index
    %c0_0 = arith.constant 0 : index
    %0 = vector.load %arg2[%c0, %c0_0] : memref<32x128xf32, #tpu.memory_space<vmem>>, vector<32x128xf32>
    %c0_1 = arith.constant 0 : index
    %c0_2 = arith.constant 0 : index
    %1 = vector.load %arg3[%c0_1, %c0_2] : memref<32x128xf32, #tpu.memory_space<vmem>>, vector<32x128xf32>
    %c0_3 = arith.constant 0 : index
    %c0_4 = arith.constant 0 : index
    %2 = vector.load %arg4[%c0_3, %c0_4] : memref<32x128xf32, #tpu.memory_space<vmem>>, vector<32x128xf32>
    %3 = arith.mulf %0, %0 : vector<32x128xf32>
    %cst = arith.constant dense<0.000000e+00> : vector<128xf32>
    %4 = vector.multi_reduction <add>, %3, %cst [0] : vector<32x128xf32> to vector<128xf32>
    %5 = vector.shape_cast %4 : vector<128xf32> to vector<1x128xf32>
    %6 = arith.mulf %1, %1 : vector<32x128xf32>
    %cst_5 = arith.constant dense<0.000000e+00> : vector<128xf32>
    %7 = vector.multi_reduction <add>, %6, %cst_5 [0] : vector<32x128xf32> to vector<128xf32>
    %8 = vector.shape_cast %7 : vector<128xf32> to vector<1x128xf32>
    %9 = arith.mulf %2, %2 : vector<32x128xf32>
    %cst_6 = arith.constant dense<0.000000e+00> : vector<128xf32>
    %10 = vector.multi_reduction <add>, %9, %cst_6 [0] : vector<32x128xf32> to vector<128xf32>
    %11 = vector.shape_cast %10 : vector<128xf32> to vector<1x128xf32>
    %12 = arith.mulf %0, %2 : vector<32x128xf32>
    %cst_7 = arith.constant dense<0.000000e+00> : vector<128xf32>
    %13 = vector.multi_reduction <add>, %12, %cst_7 [0] : vector<32x128xf32> to vector<128xf32>
    %14 = vector.shape_cast %13 : vector<128xf32> to vector<1x128xf32>
    %15 = arith.mulf %1, %2 : vector<32x128xf32>
    %cst_8 = arith.constant dense<0.000000e+00> : vector<128xf32>
    %16 = vector.multi_reduction <add>, %15, %cst_8 [0] : vector<32x128xf32> to vector<128xf32>
    %17 = vector.shape_cast %16 : vector<128xf32> to vector<1x128xf32>
    %18 = arith.mulf %0, %1 : vector<32x128xf32>
    %cst_9 = arith.constant dense<0.000000e+00> : vector<128xf32>
    %19 = vector.multi_reduction <add>, %18, %cst_9 [0] : vector<32x128xf32> to vector<128xf32>
    %20 = vector.shape_cast %19 : vector<128xf32> to vector<1x128xf32>
    %21 = arith.subf %0, %2 : vector<32x128xf32>
    %22 = math.absf %21 : vector<32x128xf32>
    %cst_10 = arith.constant dense<0.000000e+00> : vector<128xf32>
    %23 = vector.multi_reduction <add>, %22, %cst_10 [0] : vector<32x128xf32> to vector<128xf32>
    %24 = vector.shape_cast %23 : vector<128xf32> to vector<1x128xf32>
    %25 = arith.subf %1, %2 : vector<32x128xf32>
    %26 = math.absf %25 : vector<32x128xf32>
    %cst_11 = arith.constant dense<0.000000e+00> : vector<128xf32>
    %27 = vector.multi_reduction <add>, %26, %cst_11 [0] : vector<32x128xf32> to vector<128xf32>
    %28 = vector.shape_cast %27 : vector<128xf32> to vector<1x128xf32>
    %29 = arith.subf %0, %1 : vector<32x128xf32>
    %30 = math.absf %29 : vector<32x128xf32>
    %cst_12 = arith.constant dense<0.000000e+00> : vector<128xf32>
    %31 = vector.multi_reduction <add>, %30, %cst_12 [0] : vector<32x128xf32> to vector<128xf32>
    %32 = vector.shape_cast %31 : vector<128xf32> to vector<1x128xf32>
    %c0_13 = arith.constant 0 : index
    %33 = memref.load %arg1[%c0_13] : memref<28xf32, #tpu.memory_space<smem>>
    %c1 = arith.constant 1 : index
    %34 = memref.load %arg1[%c1] : memref<28xf32, #tpu.memory_space<smem>>
    %c2 = arith.constant 2 : index
    %35 = memref.load %arg1[%c2] : memref<28xf32, #tpu.memory_space<smem>>
    %c3 = arith.constant 3 : index
    %36 = memref.load %arg1[%c3] : memref<28xf32, #tpu.memory_space<smem>>
    %c4 = arith.constant 4 : index
    %37 = memref.load %arg1[%c4] : memref<28xf32, #tpu.memory_space<smem>>
    %c5 = arith.constant 5 : index
    %38 = memref.load %arg1[%c5] : memref<28xf32, #tpu.memory_space<smem>>
    %c6 = arith.constant 6 : index
    %39 = memref.load %arg1[%c6] : memref<28xf32, #tpu.memory_space<smem>>
    %c7 = arith.constant 7 : index
    %40 = memref.load %arg1[%c7] : memref<28xf32, #tpu.memory_space<smem>>
    %c8 = arith.constant 8 : index
    %41 = memref.load %arg1[%c8] : memref<28xf32, #tpu.memory_space<smem>>
    %c9 = arith.constant 9 : index
    %42 = memref.load %arg1[%c9] : memref<28xf32, #tpu.memory_space<smem>>
    %c10 = arith.constant 10 : index
    %43 = memref.load %arg1[%c10] : memref<28xf32, #tpu.memory_space<smem>>
    %c11 = arith.constant 11 : index
    %44 = memref.load %arg1[%c11] : memref<28xf32, #tpu.memory_space<smem>>
    %c12 = arith.constant 12 : index
    %45 = memref.load %arg1[%c12] : memref<28xf32, #tpu.memory_space<smem>>
    %c13 = arith.constant 13 : index
    %46 = memref.load %arg1[%c13] : memref<28xf32, #tpu.memory_space<smem>>
    %c14 = arith.constant 14 : index
    %47 = memref.load %arg1[%c14] : memref<28xf32, #tpu.memory_space<smem>>
    %c15 = arith.constant 15 : index
    %48 = memref.load %arg1[%c15] : memref<28xf32, #tpu.memory_space<smem>>
    %c16 = arith.constant 16 : index
    %49 = memref.load %arg1[%c16] : memref<28xf32, #tpu.memory_space<smem>>
    %c17 = arith.constant 17 : index
    %50 = memref.load %arg1[%c17] : memref<28xf32, #tpu.memory_space<smem>>
    %c18 = arith.constant 18 : index
    %51 = memref.load %arg1[%c18] : memref<28xf32, #tpu.memory_space<smem>>
    %c19 = arith.constant 19 : index
    %52 = memref.load %arg1[%c19] : memref<28xf32, #tpu.memory_space<smem>>
    %c20 = arith.constant 20 : index
    %53 = memref.load %arg1[%c20] : memref<28xf32, #tpu.memory_space<smem>>
    %c21 = arith.constant 21 : index
    %54 = memref.load %arg1[%c21] : memref<28xf32, #tpu.memory_space<smem>>
    %c22 = arith.constant 22 : index
    %55 = memref.load %arg1[%c22] : memref<28xf32, #tpu.memory_space<smem>>
    %c23 = arith.constant 23 : index
    %56 = memref.load %arg1[%c23] : memref<28xf32, #tpu.memory_space<smem>>
    %c24 = arith.constant 24 : index
    %57 = memref.load %arg1[%c24] : memref<28xf32, #tpu.memory_space<smem>>
    %c25 = arith.constant 25 : index
    %58 = memref.load %arg1[%c25] : memref<28xf32, #tpu.memory_space<smem>>
    %c26 = arith.constant 26 : index
    %59 = memref.load %arg1[%c26] : memref<28xf32, #tpu.memory_space<smem>>
    %c27 = arith.constant 27 : index
    %60 = memref.load %arg1[%c27] : memref<28xf32, #tpu.memory_space<smem>>
    %61 = math.sqrt %5 : vector<1x128xf32>
    %62 = math.sqrt %8 : vector<1x128xf32>
    %63 = math.sqrt %11 : vector<1x128xf32>
    %64 = arith.mulf %61, %63 : vector<1x128xf32>
    %cst_14 = arith.constant 9.99999997E-7 : f32
    %65 = vector.broadcast %cst_14 : f32 to vector<1x128xf32>
    %66 = arith.addf %64, %65 : vector<1x128xf32>
    %67 = tpu.reciprocal %66 : vector<1x128xf32> -> vector<1x128xf32>
    %68 = arith.mulf %14, %67 : vector<1x128xf32>
    %69 = arith.mulf %62, %63 : vector<1x128xf32>
    %cst_15 = arith.constant 9.99999997E-7 : f32
    %70 = vector.broadcast %cst_15 : f32 to vector<1x128xf32>
    %71 = arith.addf %69, %70 : vector<1x128xf32>
    %72 = tpu.reciprocal %71 : vector<1x128xf32> -> vector<1x128xf32>
    %73 = arith.mulf %17, %72 : vector<1x128xf32>
    %74 = arith.mulf %61, %62 : vector<1x128xf32>
    %cst_16 = arith.constant 9.99999997E-7 : f32
    %75 = vector.broadcast %cst_16 : f32 to vector<1x128xf32>
    %76 = arith.addf %74, %75 : vector<1x128xf32>
    %77 = tpu.reciprocal %76 : vector<1x128xf32> -> vector<1x128xf32>
    %78 = arith.mulf %20, %77 : vector<1x128xf32>
    %cst_17 = arith.constant 3.125000e-02 : f32
    %79 = vector.broadcast %cst_17 : f32 to vector<1x128xf32>
    %80 = arith.mulf %24, %79 : vector<1x128xf32>
    %cst_18 = arith.constant 3.125000e-02 : f32
    %81 = vector.broadcast %cst_18 : f32 to vector<1x128xf32>
    %82 = arith.mulf %28, %81 : vector<1x128xf32>
    %cst_19 = arith.constant 3.125000e-02 : f32
    %83 = vector.broadcast %cst_19 : f32 to vector<1x128xf32>
    %84 = arith.mulf %32, %83 : vector<1x128xf32>
    %cst_20 = arith.constant 0.000000e+00 : f32
    %85 = vector.broadcast %cst_20 : f32 to vector<1x128xf32>
    %86 = vector.broadcast %60 : f32 to vector<1x128xf32>
    %87 = arith.addf %85, %86 : vector<1x128xf32>
    %88 = vector.broadcast %39 : f32 to vector<1x128xf32>
    %89 = arith.mulf %68, %88 : vector<1x128xf32>
    %90 = vector.broadcast %33 : f32 to vector<1x128xf32>
    %91 = arith.addf %89, %90 : vector<1x128xf32>
    %92 = arith.mulf %68, %91 : vector<1x128xf32>
    %93 = arith.addf %87, %92 : vector<1x128xf32>
    %94 = vector.broadcast %40 : f32 to vector<1x128xf32>
    %95 = arith.mulf %68, %94 : vector<1x128xf32>
    %96 = vector.broadcast %41 : f32 to vector<1x128xf32>
    %97 = arith.mulf %73, %96 : vector<1x128xf32>
    %98 = arith.addf %95, %97 : vector<1x128xf32>
    %99 = vector.broadcast %34 : f32 to vector<1x128xf32>
    %100 = arith.addf %98, %99 : vector<1x128xf32>
    %101 = arith.mulf %73, %100 : vector<1x128xf32>
    %102 = arith.addf %93, %101 : vector<1x128xf32>
    %103 = vector.broadcast %42 : f32 to vector<1x128xf32>
    %104 = arith.mulf %68, %103 : vector<1x128xf32>
    %105 = vector.broadcast %43 : f32 to vector<1x128xf32>
    %106 = arith.mulf %73, %105 : vector<1x128xf32>
    %107 = arith.addf %104, %106 : vector<1x128xf32>
    %108 = vector.broadcast %44 : f32 to vector<1x128xf32>
    %109 = arith.mulf %78, %108 : vector<1x128xf32>
    %110 = arith.addf %107, %109 : vector<1x128xf32>
    %111 = vector.broadcast %35 : f32 to vector<1x128xf32>
    %112 = arith.addf %110, %111 : vector<1x128xf32>
    %113 = arith.mulf %78, %112 : vector<1x128xf32>
    %114 = arith.addf %102, %113 : vector<1x128xf32>
    %115 = vector.broadcast %45 : f32 to vector<1x128xf32>
    %116 = arith.mulf %68, %115 : vector<1x128xf32>
    %117 = vector.broadcast %46 : f32 to vector<1x128xf32>
    %118 = arith.mulf %73, %117 : vector<1x128xf32>
    %119 = arith.addf %116, %118 : vector<1x128xf32>
    %120 = vector.broadcast %47 : f32 to vector<1x128xf32>
    %121 = arith.mulf %78, %120 : vector<1x128xf32>
    %122 = arith.addf %119, %121 : vector<1x128xf32>
    %123 = vector.broadcast %48 : f32 to vector<1x128xf32>
    %124 = arith.mulf %80, %123 : vector<1x128xf32>
    %125 = arith.addf %122, %124 : vector<1x128xf32>
    %126 = vector.broadcast %36 : f32 to vector<1x128xf32>
    %127 = arith.addf %125, %126 : vector<1x128xf32>
    %128 = arith.mulf %80, %127 : vector<1x128xf32>
    %129 = arith.addf %114, %128 : vector<1x128xf32>
    %130 = vector.broadcast %49 : f32 to vector<1x128xf32>
    %131 = arith.mulf %68, %130 : vector<1x128xf32>
    %132 = vector.broadcast %50 : f32 to vector<1x128xf32>
    %133 = arith.mulf %73, %132 : vector<1x128xf32>
    %134 = arith.addf %131, %133 : vector<1x128xf32>
    %135 = vector.broadcast %51 : f32 to vector<1x128xf32>
    %136 = arith.mulf %78, %135 : vector<1x128xf32>
    %137 = arith.addf %134, %136 : vector<1x128xf32>
    %138 = vector.broadcast %52 : f32 to vector<1x128xf32>
    %139 = arith.mulf %80, %138 : vector<1x128xf32>
    %140 = arith.addf %137, %139 : vector<1x128xf32>
    %141 = vector.broadcast %53 : f32 to vector<1x128xf32>
    %142 = arith.mulf %82, %141 : vector<1x128xf32>
    %143 = arith.addf %140, %142 : vector<1x128xf32>
    %144 = vector.broadcast %37 : f32 to vector<1x128xf32>
    %145 = arith.addf %143, %144 : vector<1x128xf32>
    %146 = arith.mulf %82, %145 : vector<1x128xf32>
    %147 = arith.addf %129, %146 : vector<1x128xf32>
    %148 = vector.broadcast %54 : f32 to vector<1x128xf32>
    %149 = arith.mulf %68, %148 : vector<1x128xf32>
    %150 = vector.broadcast %55 : f32 to vector<1x128xf32>
    %151 = arith.mulf %73, %150 : vector<1x128xf32>
    %152 = arith.addf %149, %151 : vector<1x128xf32>
    %153 = vector.broadcast %56 : f32 to vector<1x128xf32>
    %154 = arith.mulf %78, %153 : vector<1x128xf32>
    %155 = arith.addf %152, %154 : vector<1x128xf32>
    %156 = vector.broadcast %57 : f32 to vector<1x128xf32>
    %157 = arith.mulf %80, %156 : vector<1x128xf32>
    %158 = arith.addf %155, %157 : vector<1x128xf32>
    %159 = vector.broadcast %58 : f32 to vector<1x128xf32>
    %160 = arith.mulf %82, %159 : vector<1x128xf32>
    %161 = arith.addf %158, %160 : vector<1x128xf32>
    %162 = vector.broadcast %59 : f32 to vector<1x128xf32>
    %163 = arith.mulf %84, %162 : vector<1x128xf32>
    %164 = arith.addf %161, %163 : vector<1x128xf32>
    %165 = vector.broadcast %38 : f32 to vector<1x128xf32>
    %166 = arith.addf %164, %165 : vector<1x128xf32>
    %167 = arith.mulf %84, %166 : vector<1x128xf32>
    %168 = arith.addf %147, %167 : vector<1x128xf32>
    %c0_21 = arith.constant 0 : index
    %c0_22 = arith.constant 0 : index
    %169 = vector.load %arg5[%c0_21, %c0_22] : memref<1x128xf32, #tpu.memory_space<vmem>>, vector<1x128xf32>
    tpu.vector_store %arg5[%c0_21, %c0_22], %168 {strides = array<i32>} : memref<1x128xf32, #tpu.memory_space<vmem>>, vector<1x128xf32>,
    return
  }
  func.func @transform_0(%arg0: i32) -> i32 {
    %c0_i32 = arith.constant 0 : i32
    %c0_i32_0 = arith.constant 0 : i32
    return %c0_i32 : i32
  }
  func.func @transform_1(%arg0: i32) -> (i32, i32) {
    %c0_i32 = arith.constant 0 : i32
    %c0_i32_0 = arith.constant 0 : i32
    return %c0_i32, %arg0 : i32, i32
  }
  func.func @transform_2(%arg0: i32) -> (i32, i32) {
    %c0_i32 = arith.constant 0 : i32
    %c0_i32_0 = arith.constant 0 : i32
    return %c0_i32, %arg0 : i32, i32
  }
  func.func @transform_3(%arg0: i32) -> (i32, i32) {
    %c0_i32 = arith.constant 0 : i32
    %c0_i32_0 = arith.constant 0 : i32
    return %c0_i32, %arg0 : i32, i32
  }
  func.func @transform_4(%arg0: i32) -> (i32, i32) {
    %c0_i32 = arith.constant 0 : i32
    %c0_i32_0 = arith.constant 0 : i32
    return %c0_i32, %arg0 : i32, i32
  }
}

</mosaic_0001>

<bundles_post_ra>
// kernel: tpu_custom_call.1
= control target key start
LH: loop header
LB: loop body
LE: loop exit
PB: predicated region body
PF: predicated region fallthrough
CT: control target
= control target key end

     0   :  { %9 = vsyncpa [#allocation4], 0  ;;  %s945_s0 = inlined_call_operand.vmem [shape: f32[28], index: 0, kind: input, shape index: {}]   ;;  %s946_s1 = inlined_call_operand.vmem [shape: f32[128,32], index: 1, kind: input, shape index: {}]   ;;  %s947_s2 = inlined_call_operand.vmem [shape: f32[128,32], index: 2, kind: input, shape index: {}]   ;;  %s948_s3 = inlined_call_operand.vmem [shape: f32[128,32], index: 3, kind: input, shape index: {}]   ;;  %s949_s4 = inlined_call_operand.hbm [shape: f32[1,128], index: 4, kind: output, shape index: {}]  }
   0x1   :  { %10 = vsyncpa [#allocation3], 0  ;;  %s17_s17 = sshll.u32 %s945_s0, 4  ;;  %s18_s17 = int_to_ptr.vmem [resolvable:$true] %s17_s17 }
   0x2   :  { %s508_s18 = scalar_lea.vmem %s18_s17, 16  ;;  %p513_p1 = scmp.lt.s32.totalorder %s18_s17, %s18_s17 }
   0x3   :  { %p509_p0 = scmp.ne.s32.totalorder %s18_s17, %s508_s18  ;;  %p514_p2 = scmp.lt.s32.totalorder %s508_s18, %s508_s18 }
   0x5   :  { %p515_p3 = por %p514_p2, %p513_p1 }
   0x7   :  { %p516_p4 = pnand %p515_p3, %p509_p0 }
   0x9   :  { %519 = shalt.err (!%p516_p4)
}
   0xa   :  { %s546_s19 = smov [#allocation2]  }
   0xb   :  { %20 = dma.vmem_to_smem %s18_s17, 16, %s546_s19, [#allocation4]  }
   0xc   :  { %542 = dma.done.wait [#allocation4], 16  }
   0xd   :  { %543 = vsyncadd [#allocation4], 4294967280 }
   0xe   :  { %30 = sfence }
   0xf   :  { %v31_v0 = vld [vmem:[%s946_s1] sm:$0xff]  ;;  %v32_v2 = vld [vmem:[%s946_s1 + $0x8] sm:$0xff]  ;;  %v33_v4 = vld [vmem:[%s946_s1 + $0x10] sm:$0xff]  ;;  %s830_s6 = sld [smem:[#allocation2 + $0xe]]  ;;  %s832_s7 = sld [smem:[#allocation2 + $0x12]] }
  0x10   :  { %v79_v1 = vld [vmem:[%s947_s2] sm:$0xff]  ;;  %47 = vxpose.xlu0.b32.start [1/16] (narrow) %v31_v0, 32  ;;  %v80_v3 = vld [vmem:[%s947_s2 + $0x8] sm:$0xff]  ;;  %v81_v5 = vld [vmem:[%s947_s2 + $0x10] sm:$0xff]  ;;  %s834_s8 = sld [smem:[#allocation2 + $0x17]]  ;;  %s838_s9 = sld [smem:[#allocation2 + $0x13]] }
  0x11   :  { %95 = vxpose.xlu1.b32.start [1/16] (narrow) %v79_v1, 32  ;;  %v34_v6 = vld [vmem:[%s946_s1 + $0x18] sm:$0xff]  ;;  %v35_v8 = vld [vmem:[%s946_s1 + $0x20] sm:$0xff]  ;;  %v36_v10 = vld [vmem:[%s946_s1 + $0x28] sm:$0xff]  ;;  %s842_s10 = sld [smem:[#allocation2 + $0x18]]  ;;  %s844_s11 = sld [smem:[#allocation2 + $0x19]] }
  0x12   :  { %v82_v7 = vld [vmem:[%s947_s2 + $0x18] sm:$0xff]  ;;  %v83_v9 = vld [vmem:[%s947_s2 + $0x20] sm:$0xff]  ;;  %v84_v11 = vld [vmem:[%s947_s2 + $0x28] sm:$0xff]  ;;  %s846_s12 = sld [smem:[#allocation2 + $0x6]]  ;;  %s848_s13 = sld [smem:[#allocation2 + $0x7]] }
  0x13   :  { %v37_v12 = vld [vmem:[%s946_s1 + $0x30] sm:$0xff]  ;;  %v38_v14 = vld [vmem:[%s946_s1 + $0x38] sm:$0xff]  ;;  %v39_v16 = vld [vmem:[%s946_s1 + $0x40] sm:$0xff]  ;;  %s850_s14 = sld [smem:[#allocation2 + $0x8]]  ;;  %s852_s15 = sld [smem:[#allocation2 + $0x9]] }
  0x14   :  { %48 = vxpose.xlu0.b32.cont [2/16] (narrow) %v32_v2, 32  ;;  %v85_v13 = vld [vmem:[%s947_s2 + $0x30] sm:$0xff]  ;;  %v86_v15 = vld [vmem:[%s947_s2 + $0x38] sm:$0xff]  ;;  %v87_v17 = vld [vmem:[%s947_s2 + $0x40] sm:$0xff]  ;;  %s854_s16 = sld [smem:[#allocation2]]  ;;  %s856_s17 = sld [smem:[#allocation2 + $0xa]] }
  0x15   :  { %96 = vxpose.xlu1.b32.cont [2/16] (narrow) %v80_v3, 32  ;;  %v40_v18 = vld [vmem:[%s946_s1 + $0x48] sm:$0xff]  ;;  %v41_v20 = vld [vmem:[%s946_s1 + $0x50] sm:$0xff]  ;;  %v42_v22 = vld [vmem:[%s946_s1 + $0x58] sm:$0xff]  ;;  %s858_s18 = sld [smem:[#allocation2 + $0xc]]  ;;  %s860_s19 = sld [smem:[#allocation2 + $0xd]] }
  0x16   :  { %v88_v19 = vld [vmem:[%s947_s2 + $0x48] sm:$0xff]  ;;  %v89_v21 = vld [vmem:[%s947_s2 + $0x50] sm:$0xff]  ;;  %v90_v23 = vld [vmem:[%s947_s2 + $0x58] sm:$0xff]  ;;  %s862_s20 = sld [smem:[#allocation2 + $0x1]]  ;;  %s864_s21 = sld [smem:[#allocation2 + $0x10]] }
  0x17   :  { %v43_v24 = vld [vmem:[%s946_s1 + $0x60] sm:$0xff]  ;;  %v44_v26 = vld [vmem:[%s946_s1 + $0x68] sm:$0xff]  ;;  %v45_v28 = vld [vmem:[%s946_s1 + $0x70] sm:$0xff]  ;;  %s866_s22 = sld [smem:[#allocation2 + $0x2]]  ;;  %s868_s23 = sld [smem:[#allocation2 + $0x11]] }
  0x18   :  { %49 = vxpose.xlu0.b32.cont [3/16] (narrow) %v33_v4, 32  ;;  %v91_v25 = vld [vmem:[%s947_s2 + $0x60] sm:$0xff]  ;;  %v92_v27 = vld [vmem:[%s947_s2 + $0x68] sm:$0xff]  ;;  %v93_v29 = vld [vmem:[%s947_s2 + $0x70] sm:$0xff]  ;;  %s871_s0 = sld [smem:[#allocation2 + $0x15]]  ;;  %s873_s24 = sld [smem:[#allocation2 + $0x1b]] }
  0x19   :  { %97 = vxpose.xlu1.b32.cont [3/16] (narrow) %v81_v5, 32  ;;  %v46_v30 = vld [vmem:[%s946_s1 + $0x78] sm:$0xff]  ;;  %v127_v32 = vld [vmem:[%s948_s3] sm:$0xff]  ;;  %v128_v33 = vld [vmem:[%s948_s3 + $0x8] sm:$0xff]  ;;  %s836_s1 = sld [smem:[#allocation2 + $0xf]]  ;;  %s877_s25 = sld [smem:[#allocation2 + $0x3]] }
  0x1a   :  { %v94_v31 = vld [vmem:[%s947_s2 + $0x78] sm:$0xff]  ;;  %v129_v34 = vld [vmem:[%s948_s3 + $0x10] sm:$0xff]  ;;  %v131_v36 = vld [vmem:[%s948_s3 + $0x20] sm:$0xff]  ;;  %s840_s2 = sld [smem:[#allocation2 + $0x14]]  ;;  %s879_s26 = sld [smem:[#allocation2 + $0x16]] }
  0x1b   :  { %v130_v35 = vld [vmem:[%s948_s3 + $0x18] sm:$0xff]  ;;  %v132_v37 = vld [vmem:[%s948_s3 + $0x28] sm:$0xff]  ;;  %v133_v38 = vld [vmem:[%s948_s3 + $0x30] sm:$0xff]  ;;  %s910_s27 = sld [smem:[#allocation2 + $0x1a]]  ;;  %s913_s28 = sld [smem:[#allocation2 + $0x4]] }
  0x1c   :  { %50 = vxpose.xlu0.b32.cont [4/16] (narrow) %v34_v6, 32  ;;  %v134_v39 = vld [vmem:[%s948_s3 + $0x38] sm:$0xff]  ;;  %v135_v40 = vld [vmem:[%s948_s3 + $0x40] sm:$0xff]  ;;  %v136_v41 = vld [vmem:[%s948_s3 + $0x48] sm:$0xff]  ;;  %s915_s29 = sld [smem:[#allocation2 + $0x5]]  ;;  %s547_s30 = smov [#allocation5]  }
  0x1d   :  { %98 = vxpose.xlu1.b32.cont [4/16] (narrow) %v82_v7, 32  ;;  %v137_v42 = vld [vmem:[%s948_s3 + $0x50] sm:$0xff]  ;;  %v138_v43 = vld [vmem:[%s948_s3 + $0x58] sm:$0xff]  ;;  %v139_v44 = vld [vmem:[%s948_s3 + $0x60] sm:$0xff]  ;;  %s458_s5 = sshll.u32 %s547_s30, 4  ;;  %s459_s5 = int_to_ptr.vmem [resolvable:$true] %s458_s5 }
  0x1e   :  { %v140_v45 = vld [vmem:[%s948_s3 + $0x68] sm:$0xff]  ;;  %v141_v46 = vld [vmem:[%s948_s3 + $0x70] sm:$0xff]  ;;  %v142_v47 = vld [vmem:[%s948_s3 + $0x78] sm:$0xff]  ;;  %s828_s3 = sld [smem:[#allocation2 + $0xb]]  ;;  %p525_p6 = scmp.lt.s32.totalorder %s459_s5, %s459_s5 }
  0x20   :  { %51 = vxpose.xlu0.b32.cont [5/16] (narrow) %v35_v8, 32 }
  0x21   :  { %99 = vxpose.xlu1.b32.cont [5/16] (narrow) %v83_v9, 32 }
  0x24   :  { %52 = vxpose.xlu0.b32.cont [6/16] (narrow) %v36_v10, 32 }
  0x25   :  { %100 = vxpose.xlu1.b32.cont [6/16] (narrow) %v84_v11, 32 }
  0x28   :  { %53 = vxpose.xlu0.b32.cont [7/16] (narrow) %v37_v12, 32 }
  0x29   :  { %101 = vxpose.xlu1.b32.cont [7/16] (narrow) %v85_v13, 32 }
  0x2c   :  { %54 = vxpose.xlu0.b32.cont [8/16] (narrow) %v38_v14, 32 }
  0x2d   :  { %102 = vxpose.xlu1.b32.cont [8/16] (narrow) %v86_v15, 32 }
  0x30   :  { %55 = vxpose.xlu0.b32.cont [9/16] (narrow) %v39_v16, 32 }
  0x31   :  { %103 = vxpose.xlu1.b32.cont [9/16] (narrow) %v87_v17, 32 }
  0x34   :  { %56 = vxpose.xlu0.b32.cont [10/16] (narrow) %v40_v18, 32 }
  0x35   :  { %104 = vxpose.xlu1.b32.cont [10/16] (narrow) %v88_v19, 32 }
  0x38   :  { %57 = vxpose.xlu0.b32.cont [11/16] (narrow) %v41_v20, 32 }
  0x39   :  { %105 = vxpose.xlu1.b32.cont [11/16] (narrow) %v89_v21, 32 }
  0x3c   :  { %58 = vxpose.xlu0.b32.cont [12/16] (narrow) %v42_v22, 32 }
  0x3d   :  { %106 = vxpose.xlu1.b32.cont [12/16] (narrow) %v90_v23, 32 }
  0x40   :  { %59 = vxpose.xlu0.b32.cont [13/16] (narrow) %v43_v24, 32 }
  0x41   :  { %107 = vxpose.xlu1.b32.cont [13/16] (narrow) %v91_v25, 32 }
  0x44   :  { %60 = vxpose.xlu0.b32.cont [14/16] (narrow) %v44_v26, 32 }
  0x45   :  { %108 = vxpose.xlu1.b32.cont [14/16] (narrow) %v92_v27, 32 }
  0x48   :  { %61 = vxpose.xlu0.b32.cont [15/16] (narrow) %v45_v28, 32 }
  0x49   :  { %109 = vxpose.xlu1.b32.cont [15/16] (narrow) %v93_v29, 32 }
  0x4c   :  { %62 = vxpose.xlu0.b32.end [16/16] (narrow) %v46_v30, 32 }
  0x4d   :  { %110 = vxpose.xlu1.b32.end [16/16] (narrow) %v94_v31, 32 }
  0x50   :  { %143 = vxpose.xlu0.b32.start [1/16] (narrow) %v127_v32, 32 }
  0x54   :  { %144 = vxpose.xlu0.b32.cont [2/16] (narrow) %v128_v33, 32 }
  0x58   :  { %145 = vxpose.xlu0.b32.cont [3/16] (narrow) %v129_v34, 32 }
  0x5c   :  { %146 = vxpose.xlu0.b32.cont [4/16] (narrow) %v130_v35, 32 }
  0x60   :  { %147 = vxpose.xlu0.b32.cont [5/16] (narrow) %v131_v36, 32 }
  0x64   :  { %148 = vxpose.xlu0.b32.cont [6/16] (narrow) %v132_v37, 32 }
  0x68   :  { %149 = vxpose.xlu0.b32.cont [7/16] (narrow) %v133_v38, 32 }
  0x6c   :  { %150 = vxpose.xlu0.b32.cont [8/16] (narrow) %v134_v39, 32 }
  0x70   :  { %151 = vxpose.xlu0.b32.cont [9/16] (narrow) %v135_v40, 32 }
  0x74   :  { %152 = vxpose.xlu0.b32.cont [10/16] (narrow) %v136_v41, 32 }
  0x78   :  { %153 = vxpose.xlu0.b32.cont [11/16] (narrow) %v137_v42, 32 }
  0x7c   :  { %154 = vxpose.xlu0.b32.cont [12/16] (narrow) %v138_v43, 32 }
  0x80   :  { %155 = vxpose.xlu0.b32.cont [13/16] (narrow) %v139_v44, 32 }
  0x84   :  { %156 = vxpose.xlu0.b32.cont [14/16] (narrow) %v140_v45, 32 }
  0x88   :  { %157 = vxpose.xlu0.b32.cont [15/16] (narrow) %v141_v46, 32 }
  0x8c   :  { %158 = vxpose.xlu0.b32.end [16/16] (narrow) %v142_v47, 32 }
  0x90   :  { %v722_v49 = vpop.trf.xlu0 }
  0x91   :  { %v720_v48 = vpop.trf.xlu1  ;;  %v175_v56 = vmul.f32 %v722_v49, %v722_v49 }
  0x92   :  { %v188_v53 = vmul.f32 %v720_v48, %v720_v48  ;;  %v287_v19 = vsub.f32 %v722_v49, %v720_v48  ;;  %v240_v23 = vmul.f32 %v720_v48, %v722_v49 }
  0x94   :  { %v726_v51 = vpop.trf.xlu0  ;;  %v291_v24 = vand.u32 2147483647, %v287_v19 }
  0x95   :  { %v724_v50 = vpop.trf.xlu1  ;;  %v176_v57 = vmul.f32 %v726_v51, %v726_v51 }
  0x96   :  { %v189_v54 = vmul.f32 %v724_v50, %v724_v50  ;;  %v288_v20 = vsub.f32 %v726_v51, %v724_v50  ;;  %v241_v25 = vmul.f32 %v724_v50, %v726_v51 }
  0x97   :  { %v179_v60 = vadd.f32 %v176_v57, %v175_v56 }
  0x98   :  { %v734_v55 = vpop.trf.xlu0  ;;  %v192_v58 = vadd.f32 %v189_v54, %v188_v53  ;;  %v292_v26 = vand.u32 2147483647, %v288_v20  ;;  %v244_v32 = vadd.f32 %v241_v25, %v240_v23 }
  0x99   :  { %v728_v52 = vpop.trf.xlu1  ;;  %v177_v61 = vmul.f32 %v734_v55, %v734_v55 }
  0x9a   :  { %v190_v59 = vmul.f32 %v728_v52, %v728_v52  ;;  %v289_v28 = vsub.f32 %v734_v55, %v728_v52  ;;  %v295_v33 = vadd.f32 %v292_v26, %v291_v24  ;;  %v242_v34 = vmul.f32 %v728_v52, %v734_v55 }
  0x9b   :  { %v180_v2 = vadd.f32 %v179_v60, %v177_v61 }
  0x9c   :  { %v746_v63 = vpop.trf.xlu0  ;;  %v193_v0 = vadd.f32 %v192_v58, %v190_v59  ;;  %v293_v36 = vand.u32 2147483647, %v289_v28  ;;  %v245_v42 = vadd.f32 %v244_v32, %v242_v34 }
  0x9d   :  { %v744_v62 = vpop.trf.xlu1  ;;  %v178_v3 = vmul.f32 %v746_v63, %v746_v63 }
  0x9e   :  { %v191_v1 = vmul.f32 %v744_v62, %v744_v62  ;;  %v290_v37 = vsub.f32 %v746_v63, %v744_v62  ;;  %v243_v43 = vmul.f32 %v744_v62, %v746_v63  ;;  %v296_v45 = vadd.f32 %v295_v33, %v293_v36 }
  0x9f   :  { %v181_v5 = vadd.f32 %v180_v2, %v178_v3 }
  0xa0   :  { %v194_v4 = vadd.f32 %v193_v0, %v191_v1  ;;  %v294_v46 = vand.u32 2147483647, %v290_v37  ;;  %v246_v56 = vadd.f32 %v245_v42, %v243_v43 }
  0xa1   :  { %v182_v7 = vrot.slane %v181_v5, 4 }
  0xa2   :  { %v195_v6 = vrot.slane %v194_v4, 4  ;;  %v297_v59 = vadd.f32 %v296_v45, %v294_v46 }
  0xa3   :  { %v183_v9 = vadd.f32 %v182_v7, %v181_v5 }
  0xa4   :  { %v196_v8 = vadd.f32 %v195_v6, %v194_v4  ;;  %v298_v37 = vrot.slane %v297_v59, 4 }
  0xa5   :  { %v184_v11 = vrot.slane %v183_v9, 2 }
  0xa6   :  { %v197_v10 = vrot.slane %v196_v8, 2 }
  0xa7   :  { %v185_v13 = vadd.f32 %v184_v11, %v183_v9 }
  0xa8   :  { %v198_v12 = vadd.f32 %v197_v10, %v196_v8 }
  0xa9   :  { %v186_v15 = vrot.slane %v185_v13, 1 }
  0xaa   :  { %v199_v14 = vrot.slane %v198_v12, 1 }
  0xab   :  { %v756_v18 = vadd.f32 %v186_v15, %v185_v13 }
  0xac   :  { %v754_v17 = vadd.f32 %v199_v14, %v198_v12 }
  0xad   :  { %vm334_vm1 = vcmp.eq.f32.partialorder %v756_v18, inf  ;;  %vm336_vm3 = vcmp.eq.f32.partialorder %v756_v18, 0.0  ;;  %v337_v2 = vand.u32 2147483648, %v756_v18 }
  0xae   :  { %496 = vrsqrt.f32 %v754_v17  ;;  %vm341_vm0 = vcmp.eq.f32.partialorder %v754_v17, inf  ;;  %vm343_vm2 = vcmp.eq.f32.partialorder %v754_v17, 0.0  ;;  %v344_v61 = vand.u32 2147483648, %v754_v17 }
  0xaf   :  { %498 = vrsqrt.f32 %v756_v18 }
  0xb8   :  { %v497_v41 = vpop.eup %496 }
  0xb9   :  { %v499_v44 = vpop.eup %498  ;;  %v340_v54 = vmul.f32 %v497_v41, %v754_v17 }
  0xba   :  { %v333_v57 = vmul.f32 %v499_v44, %v756_v18 }
  0xbb   :  { %v342_v5 = vsel %vm341_vm0, %v754_v17, %v340_v54 }
  0xbc   :  { %v335_v6 = vsel %vm334_vm1, %v756_v18, %v333_v57 }
  0xd0   :  { %v752_v16 = vpop.trf.xlu0 }
  0xd1   :  { %v201_v29 = vmul.f32 %v752_v16, %v752_v16  ;;  %v253_v0 = vsub.f32 %v722_v49, %v752_v16  ;;  %v214_v9 = vmul.f32 %v752_v16, %v722_v49  ;;  %v270_v10 = vsub.f32 %v720_v48, %v752_v16 }
  0xd2   :  { %v227_v20 = vmul.f32 %v752_v16, %v720_v48 }
  0xd3   :  { %v257_v13 = vand.u32 2147483647, %v253_v0 }
  0xd4   :  { %v160_v21 = vpop.trf.xlu0 }
  0xd5   :  { %v202_v22 = vmul.f32 %v160_v21, %v160_v21  ;;  %v254_v58 = vsub.f32 %v726_v51, %v160_v21  ;;  %v271_v3 = vsub.f32 %v724_v50, %v160_v21  ;;  %v215_v11 = vmul.f32 %v160_v21, %v726_v51 }
  0xd6   :  { %v228_v14 = vmul.f32 %v160_v21, %v724_v50  ;;  %v274_v21 = vand.u32 2147483647, %v270_v10 }
  0xd7   :  { %v205_v31 = vadd.f32 %v202_v22, %v201_v29  ;;  %v258_v7 = vand.u32 2147483647, %v254_v58  ;;  %v275_v22 = vand.u32 2147483647, %v271_v3  ;;  %v218_v26 = vadd.f32 %v215_v11, %v214_v9 }
  0xd8   :  { %v768_v27 = vpop.trf.xlu0  ;;  %v231_v48 = vadd.f32 %v228_v14, %v227_v20  ;;  %v402_v14 = vstv %s830_s6  ;;  %s524_s6 = scalar_lea.vmem %s459_s5, 32 }
  0xd9   :  { %v203_v30 = vmul.f32 %v768_v27, %v768_v27  ;;  %v255_v1 = vsub.f32 %v734_v55, %v768_v27  ;;  %v272_v19 = vsub.f32 %v728_v52, %v768_v27  ;;  %v216_v49 = vmul.f32 %v768_v27, %v734_v55 }
  0xda   :  { %v261_v24 = vadd.f32 %v258_v7, %v257_v13  ;;  %v229_v51 = vmul.f32 %v768_v27, %v728_v52  ;;  %v247_v52 = vrot.slane %v246_v56, 4  ;;  %v338_v27 = vsel %vm336_vm3, %v337_v2, %v335_v6 }
  0xdb   :  { %v206_v38 = vadd.f32 %v205_v31, %v203_v30  ;;  %v259_v15 = vand.u32 2147483647, %v255_v1  ;;  %v276_v16 = vand.u32 2147483647, %v272_v19  ;;  %v345_v30 = vsel %vm343_vm2, %v344_v61, %v342_v5 }
  0xdc   :  { %v778_v35 = vpop.trf.xlu0  ;;  %v219_v31 = vadd.f32 %v218_v26, %v216_v49  ;;  %v278_v32 = vadd.f32 %v275_v22, %v274_v21  ;;  %v232_v33 = vadd.f32 %v231_v48, %v229_v51  ;;  %v248_v41 = vadd.f32 %v247_v52, %v246_v56 }
  0xdd   :  { %v204_v39 = vmul.f32 %v778_v35, %v778_v35  ;;  %v256_v8 = vsub.f32 %v746_v63, %v778_v35  ;;  %v273_v50 = vsub.f32 %v744_v62, %v778_v35  ;;  %v217_v28 = vmul.f32 %v778_v35, %v746_v63 }
  0xde   :  { %v262_v29 = vadd.f32 %v261_v24, %v259_v15  ;;  %v230_v55 = vmul.f32 %v778_v35, %v744_v62  ;;  %v299_v35 = vadd.f32 %v298_v37, %v297_v59  ;;  %v249_v45 = vrot.slane %v248_v41, 2 }
  0xdf   :  { %v207_v40 = vadd.f32 %v206_v38, %v204_v39  ;;  %v260_v25 = vand.u32 2147483647, %v256_v8  ;;  %v277_v36 = vand.u32 2147483647, %v273_v50  ;;  %v220_v63 = vadd.f32 %v219_v31, %v217_v28 }
  0xe0   :  { %v361_v38 = vmul.f32 %v345_v30, %v338_v27  ;;  %v279_v39 = vadd.f32 %v278_v32, %v276_v16  ;;  %v300_v57 = vrot.slane %v299_v35, 2  ;;  %v417_v15 = vstv %s832_s7 }
  0xe1   :  { %v208_v47 = vrot.slane %v207_v40, 4  ;;  %v263_v34 = vadd.f32 %v262_v29, %v260_v25  ;;  %v221_v17 = vrot.slane %v220_v63, 4  ;;  %v405_v22 = vstv %s836_s1 }
  0xe2   :  { %v280_v62 = vadd.f32 %v279_v39, %v277_v36  ;;  %v362_v18 = vadd.f32 1e-06, %v361_v38  ;;  %v301_v8 = vadd.f32 %v300_v57, %v299_v35  ;;  %v435_v49 = vstv %s834_s8 }
  0xe3   :  { %v209_v53 = vadd.f32 %v208_v47, %v207_v40  ;;  %v233_v40 = vadd.f32 %v232_v33, %v230_v55  ;;  %v264_v42 = vrot.slane %v263_v34, 4  ;;  %v222_v54 = vadd.f32 %v221_v17, %v220_v63 }
  0xe4   :  { %v281_v47 = vrot.slane %v280_v62, 4  ;;  %v302_v20 = vrot.slane %v301_v8, 1  ;;  %v420_v24 = vstv %s838_s9  ;;  %v423_v51 = vstv %s840_s2 }
  0xe5   :  { %v210_v60 = vrot.slane %v209_v53, 2  ;;  %v234_v43 = vrot.slane %v233_v40, 4  ;;  %v265_v46 = vadd.f32 %v264_v42, %v263_v34  ;;  %v438_v25 = vstv %s842_s10 }
  0xe6   :  { %v282_v1 = vadd.f32 %v281_v47, %v280_v62  ;;  %v370_v28 = vstv %s846_s12  ;;  %v441_v48 = vstv %s844_s11  ;;  %v376_v29 = vstv %s848_s13 }
  0xe7   :  { %v211_v4 = vadd.f32 %v210_v60, %v209_v53  ;;  %v235_v58 = vadd.f32 %v234_v43, %v233_v40  ;;  %v250_v60 = vadd.f32 %v249_v45, %v248_v41  ;;  %v266_v0 = vrot.slane %v265_v46, 2 }
  0xe8   :  { %v283_v11 = vrot.slane %v282_v1, 2  ;;  %v378_v55 = vstv %s850_s14  ;;  %v372_v31 = vstv %s854_s16  ;;  %v387_v32 = vstv %s856_s17 }
  0xe9   :  { %v212_v12 = vrot.slane %v211_v4, 1  ;;  %v236_v5 = vrot.slane %v235_v58, 2  ;;  %v251_v9 = vrot.slane %v250_v60, 1  ;;  %v267_v10 = vadd.f32 %v266_v0, %v265_v46 }
  0xea   :  { %v284_v26 = vadd.f32 %v283_v11, %v282_v1  ;;  %v381_v34 = vstv %s862_s20  ;;  %v397_v36 = vstv %s858_s18  ;;  %v399_v63 = vstv %s860_s19 }
  0xeb   :  { %v213_v23 = vadd.f32 %v212_v12, %v211_v4  ;;  %v223_v4 = vrot.slane %v222_v54, 2  ;;  %v390_v12 = vstv %s828_s3  ;;  %v237_v19 = vadd.f32 %v236_v5, %v235_v58  ;;  %s520_s3 = scalar_lea.vmem %s459_s5, 16 }
  0xec   :  { %v268_v21 = vrot.slane %v267_v10, 1  ;;  %v285_v38 = vrot.slane %v284_v26, 1  ;;  %v393_v39 = vstv %s866_s22  ;;  %v412_v40 = vstv %s864_s21  ;;  %p521_p5 = scmp.ne.s32.totalorder %s459_s5, %s520_s3  ;;  %p526_p7 = scmp.lt.s32.totalorder %s524_s6, %s520_s3 }
  0xed   :  { %500 = vrsqrt.f32 %v213_v23  ;;  %vm348_vm4 = vcmp.eq.f32.partialorder %v213_v23, inf  ;;  %v351_v56 = vand.u32 2147483648, %v213_v23  ;;  %vm350_vm5 = vcmp.eq.f32.partialorder %v213_v23, 0.0 }
  0xee   :  { %502 = vrcp.f32 %v362_v18  ;;  %v224_v13 = vadd.f32 %v223_v4, %v222_v54  ;;  %v238_v52 = vrot.slane %v237_v19, 1  ;;  %v269_v37 = vadd.f32 %v268_v21, %v267_v10  ;;  %p527_p8 = por %p526_p7, %p525_p6 }
  0xef   :  { %v368_v42 = vstv %s873_s24  ;;  %v414_v62 = vstv %s868_s23  ;;  %v430_v17 = vstv %s871_s0  ;;  %v432_v45 = vstv %s879_s26 }
  0xf0   :  { %v225_v16 = vrot.slane %v224_v13, 1  ;;  %v239_v18 = vadd.f32 %v238_v52, %v237_v19  ;;  %v365_v58 = vmul.f32 0.03125, %v269_v37  ;;  %p528_p9 = pnand %p527_p8, %p521_p5 }
  0xf2   :  { %v226_v41 = vadd.f32 %v225_v16, %v224_v13  ;;  %v406_v19 = vmul.f32 %v405_v22, %v365_v58  ;;  %v444_v22 = vstv %s910_s27 }
  0xf7   :  { %v501_v44 = vpop.eup %500 }
  0xf8   :  { %v347_v53 = vmul.f32 %v501_v44, %v213_v23  ;;  %v503_v50 = vpop.eup %502  ;;  %v408_v44 = vstv %s877_s25 }
  0xfa   :  { %v349_v59 = vsel %vm348_vm4, %v213_v23, %v347_v53  ;;  %v252_v23 = vadd.f32 %v251_v9, %v250_v60 }
  0xfb   :  { %v352_v61 = vsel %vm350_vm5, %v351_v56, %v349_v59  ;;  %v286_v59 = vadd.f32 %v285_v38, %v284_v26  ;;  %v421_v26 = vmul.f32 %v420_v24, %v365_v58  ;;  %v426_v38 = vstv %s913_s28 }
  0xfc   :  { %v353_v2 = vmul.f32 %v352_v61, %v338_v27  ;;  %v357_v3 = vmul.f32 %v352_v61, %v345_v30  ;;  %v385_v30 = vstv %s852_s15  ;;  %v303_v27 = vadd.f32 %v302_v20, %v301_v8 }
  0xfd   :  { %v893_v33 = vmul.f32 %v503_v50, %v252_v23  ;;  %v366_v11 = vmul.f32 0.03125, %v286_v59 }
  0xfe   :  { %v354_v6 = vadd.f32 1e-06, %v353_v2  ;;  %v358_v7 = vadd.f32 1e-06, %v357_v3  ;;  %v903_v43 = vmul.f32 0.03125, %v303_v27 }
  0xff   :  { %v391_v53 = vmul.f32 %v390_v12, %v893_v33  ;;  %v403_v54 = vmul.f32 %v402_v14, %v893_v33  ;;  %v418_v56 = vmul.f32 %v417_v15, %v893_v33  ;;  %v436_v60 = vmul.f32 %v435_v49, %v893_v33 }
 0x100   :  { %504 = vrcp.f32 %v354_v6 }
 0x101   :  { %506 = vrcp.f32 %v358_v7 }
 0x10a   :  { %v505_v35 = vpop.eup %504 }
 0x10b   :  { %v507_v46 = vpop.eup %506  ;;  %v356_v47 = vmul.f32 %v505_v35, %v226_v41 }
 0x10c   :  { %v360_v57 = vmul.f32 %v507_v46, %v239_v18 }
 0x10d   :  { %v371_v61 = vmul.f32 %v370_v28, %v356_v47  ;;  %v377_v0 = vmul.f32 %v376_v29, %v356_v47  ;;  %v386_v1 = vmul.f32 %v385_v30, %v356_v47  ;;  %v398_v2 = vmul.f32 %v397_v36, %v356_v47 }
 0x10e   :  { %v379_v3 = vmul.f32 %v378_v55, %v360_v57  ;;  %v388_v4 = vmul.f32 %v387_v32, %v360_v57  ;;  %v400_v5 = vmul.f32 %v399_v63, %v360_v57  ;;  %v413_v6 = vmul.f32 %v412_v40, %v356_v47 }
 0x10f   :  { %v373_v7 = vadd.f32 %v372_v31, %v371_v61  ;;  %v415_v8 = vmul.f32 %v414_v62, %v360_v57  ;;  %v431_v9 = vmul.f32 %v430_v17, %v356_v47  ;;  %v433_v10 = vmul.f32 %v432_v45, %v360_v57 }
 0x110   :  { %v380_v12 = vadd.f32 %v379_v3, %v377_v0  ;;  %v389_v13 = vadd.f32 %v388_v4, %v386_v1  ;;  %v401_v14 = vadd.f32 %v400_v5, %v398_v2  ;;  %v439_v55 = vmul.f32 %v438_v25, %v365_v58 }
 0x111   :  { %v374_v15 = vmul.f32 %v373_v7, %v356_v47  ;;  %v416_v20 = vadd.f32 %v415_v8, %v413_v6  ;;  %v434_v49 = vadd.f32 %v433_v10, %v431_v9  ;;  %v424_v32 = vmul.f32 %v423_v51, %v366_v11 }
 0x112   :  { %v382_v23 = vadd.f32 %v381_v34, %v380_v12  ;;  %v392_v50 = vadd.f32 %v391_v53, %v389_v13  ;;  %v404_v21 = vadd.f32 %v403_v54, %v401_v14  ;;  %v442_v34 = vmul.f32 %v441_v48, %v366_v11 }
 0x113   :  { %v375_v28 = vadd.f32 %v374_v15, %v368_v42  ;;  %v419_v16 = vadd.f32 %v418_v56, %v416_v20  ;;  %v437_v29 = vadd.f32 %v436_v60, %v434_v49  ;;  %v445_v25 = vmul.f32 %v444_v22, %v903_v43 }
 0x114   :  { %v383_v30 = vmul.f32 %v382_v23, %v360_v57  ;;  %v394_v52 = vadd.f32 %v393_v39, %v392_v50  ;;  %v407_v27 = vadd.f32 %v406_v19, %v404_v21  ;;  %v447_v62 = vstv %s915_s29 }
 0x115   :  { %v422_v31 = vadd.f32 %v421_v26, %v419_v16  ;;  %v440_v36 = vadd.f32 %v439_v55, %v437_v29 }
 0x116   :  { %v384_v63 = vadd.f32 %v383_v30, %v375_v28  ;;  %v395_v24 = vmul.f32 %v394_v52, %v893_v33  ;;  %v409_v37 = vadd.f32 %v408_v44, %v407_v27 }
 0x117   :  { %v425_v40 = vadd.f32 %v424_v32, %v422_v31  ;;  %v443_v41 = vadd.f32 %v442_v34, %v440_v36 }
 0x118   :  { %v396_v42 = vadd.f32 %v395_v24, %v384_v63  ;;  %v410_v39 = vmul.f32 %v409_v37, %v365_v58 }
 0x119   :  { %v427_v17 = vadd.f32 %v426_v38, %v425_v40  ;;  %v446_v35 = vadd.f32 %v445_v25, %v443_v41 }
 0x11a   :  { %v411_v18 = vadd.f32 %v410_v39, %v396_v42 }
 0x11b   :  { %v428_v45 = vmul.f32 %v427_v17, %v366_v11  ;;  %v448_v51 = vadd.f32 %v447_v62, %v446_v35 }
 0x11d   :  { %v429_v48 = vadd.f32 %v428_v45, %v411_v18  ;;  %v449_v46 = vmul.f32 %v448_v51, %v903_v43 }
 0x11f   :  { %v450_v33 = vadd.f32 %v449_v46, %v429_v48 }
 0x121   :  { %451 = vst [vmem:[#allocation5] sm:$0x1] %v450_v33 }
 0x122   :  { %531 = shalt.err (!%p528_p9)
}
 0x123   :  { %s532_s1 = scalar_lea.hbm %s949_s4, 16 }
 0x124   :  { %p533_p10 = scmp.ne.s32.totalorder %s949_s4, %s532_s1  ;;  %p536_p11 = scmp.lt.u32.totalorder %s532_s1, %s949_s4 }
 0x126   :  { %p538_p12 = pnand %p536_p11, %p533_p10 }
 0x128   :  { %541 = shalt.err (!%p538_p12)
}
 0x129   :  { %461 = dma.vmem_to_hbm [thread:$0]  %s459_s5, 16, %s949_s4, [#allocation3]  }
 0x12a   :  { %544 = dma.done.wait [#allocation3], 16  }
 0x12b   :  { %545 = vsyncadd [#allocation3], 4294967280 }
 0x12c   :  { %465 = vsyncpa [#allocation3], 1 }
 0x12d   :  { %466 = vsyncpa [#allocation4], 1 }

// kernel: tpu_custom_call.1
= control target key start
LH: loop header
LB: loop body
LE: loop exit
PB: predicated region body
PF: predicated region fallthrough
CT: control target
= control target key end

     0   :  { %9 = vsyncpa [#allocation5], 0  ;;  %s856_s0 = inlined_call_operand.hbm [shape: f32[28], index: 0, kind: input, shape index: {}]   ;;  %s857_s1 = inlined_call_operand.hbm [shape: f32[32,128], index: 1, kind: input, shape index: {}]   ;;  %s858_s2 = inlined_call_operand.hbm [shape: f32[32,128], index: 2, kind: input, shape index: {}]   ;;  %s859_s3 = inlined_call_operand.hbm [shape: f32[32,128], index: 3, kind: input, shape index: {}]   ;;  %s860_s4 = inlined_call_operand.hbm [shape: f32[1,128], index: 4, kind: output, shape index: {}]  }
   0x1   :  { %10 = vsyncpa [#allocation3], 0 }
   0x2   :  { %11 = vsyncpa [#allocation8], 0 }
   0x3   :  { %12 = vsyncpa [#allocation4], 0  ;;  %s528_s15 = smov [#allocation7]   ;;  %s529_s17 = smov [#allocation6]  }
   0x4   :  { %s38_s16 = sshll.u32 %s528_s15, 4  ;;  %s26_s18 = sshll.u32 %s529_s17, 4  ;;  %s39_s16 = int_to_ptr.vmem [resolvable:$true] %s38_s16  ;;  %s27_s18 = int_to_ptr.vmem [resolvable:$true] %s26_s18 }
   0x5   :  { %s422_s21 = scalar_lea.hbm %s858_s2, 512 }
   0x6   :  { %p423_p0 = scmp.ne.s32.totalorder %s858_s2, %s422_s21  ;;  %p426_p1 = scmp.lt.u32.totalorder %s422_s21, %s858_s2 }
   0x8   :  { %p428_p2 = pnand %p426_p1, %p423_p0 }
   0xa   :  { %431 = shalt.err (!%p428_p2)
}
   0xb   :  { %s432_s26 = scalar_lea.vmem %s39_s16, 512  ;;  %p437_p4 = scmp.lt.s32.totalorder %s39_s16, %s39_s16 }
   0xc   :  { %p433_p3 = scmp.ne.s32.totalorder %s39_s16, %s432_s26  ;;  %p438_p5 = scmp.lt.s32.totalorder %s432_s26, %s432_s26 }
   0xe   :  { %p439_p6 = por %p438_p5, %p437_p4 }
  0x10   :  { %p440_p7 = pnand %p439_p6, %p433_p3 }
  0x12   :  { %443 = shalt.err (!%p440_p7)
}
  0x13   :  { %s530_s27 = smov 128   ;;  %s531_s28 = smov 8  }
  0x14   :  { %44 = dma.hbm_to_vmem [thread:$0]  %s858_s2, 512, %s39_s16, [#allocation8], %s530_s27, %s530_s27, %s531_s28  }
  0x15   :  { %s444_s7 = scalar_lea.hbm %s856_s0, 16 }
  0x16   :  { %p445_p8 = scmp.ne.s32.totalorder %s856_s0, %s444_s7  ;;  %p448_p9 = scmp.lt.u32.totalorder %s444_s7, %s856_s0 }
  0x18   :  { %p450_p10 = pnand %p448_p9, %p445_p8 }
  0x1a   :  { %453 = shalt.err (!%p450_p10)
}
  0x1b   :  { %s532_s12 = smov [#allocation2]   ;;  %s454_s16 = scalar_lea.hbm %s857_s1, 512 }
  0x1c   :  { %20 = dma.hbm_to_smem %s856_s0, 16, %s532_s12, [#allocation5]  }
  0x1d   :  { %p455_p11 = scmp.ne.s32.totalorder %s857_s1, %s454_s16  ;;  %p458_p12 = scmp.lt.u32.totalorder %s454_s16, %s857_s1 }
  0x1f   :  { %p460_p13 = pnand %p458_p12, %p455_p11 }
  0x21   :  { %463 = shalt.err (!%p460_p13)
}
  0x22   :  { %s464_s22 = scalar_lea.vmem %s27_s18, 512  ;;  %p469_p1 = scmp.lt.s32.totalorder %s27_s18, %s27_s18 }
  0x23   :  { %p465_p0 = scmp.ne.s32.totalorder %s27_s18, %s464_s22  ;;  %p470_p2 = scmp.lt.s32.totalorder %s464_s22, %s464_s22 }
  0x25   :  { %p471_p3 = por %p470_p2, %p469_p1 }
  0x27   :  { %p472_p4 = pnand %p471_p3, %p465_p0 }
  0x29   :  { %475 = shalt.err (!%p472_p4)
}
  0x2a   :  { %32 = dma.hbm_to_vmem [thread:$0]  %s857_s1, 512, %s27_s18, [#allocation3], %s530_s27, %s530_s27, %s531_s28  }
  0x2b   :  { %s533_s24 = smov [#allocation9]   ;;  %s476_s30 = scalar_lea.hbm %s859_s3, 512 }
  0x2c   :  { %s50_s25 = sshll.u32 %s533_s24, 4  ;;  %p477_p5 = scmp.ne.s32.totalorder %s859_s3, %s476_s30  ;;  %s51_s25 = int_to_ptr.vmem [resolvable:$true] %s50_s25 }
  0x2d   :  { %p480_p6 = scmp.lt.u32.totalorder %s476_s30, %s859_s3 }
  0x2f   :  { %p482_p7 = pnand %p480_p6, %p477_p5 }
  0x31   :  { %485 = shalt.err (!%p482_p7)
}
  0x32   :  { %s486_s9 = scalar_lea.vmem %s51_s25, 512  ;;  %p491_p9 = scmp.lt.s32.totalorder %s51_s25, %s51_s25 }
  0x33   :  { %p487_p8 = scmp.ne.s32.totalorder %s51_s25, %s486_s9  ;;  %p492_p10 = scmp.lt.s32.totalorder %s486_s9, %s486_s9 }
  0x35   :  { %p493_p11 = por %p492_p10, %p491_p9 }
  0x37   :  { %p494_p12 = pnand %p493_p11, %p487_p8 }
  0x39   :  { %497 = shalt.err (!%p494_p12)
}
  0x3a   :  { %56 = dma.hbm_to_vmem [thread:$0]  %s859_s3, 512, %s51_s25, [#allocation8], %s530_s27, %s530_s27, %s531_s28  }
  0x3b   :  { %520 = dma.done.wait [#allocation5], 16  }
  0x3c   :  { %521 = vsyncadd [#allocation5], 4294967280 }
  0x3d   :  { %522 = dma.done.wait [#allocation3], 512  }
  0x3e   :  { %523 = vsyncadd [#allocation3], 4294966784 }
  0x3f   :  { %524 = dma.done.wait [#allocation8], 1024  }
  0x40   :  { %525 = vsyncadd [#allocation8], 4294966272 }
  0x41   :  { %69 = sfence }
  0x42   :  { %v617_v0 = vld [vmem:[#allocation6] sm:$0xff]  ;;  %v619_v1 = vld [vmem:[#allocation6 + $0x8] sm:$0xff]  ;;  %v621_v2 = vld [vmem:[#allocation6 + $0x10] sm:$0xff]  ;;  %s724_s3 = sld [smem:[#allocation2]]  ;;  %s729_s27 = sld [smem:[#allocation2 + $0x1]] }
  0x43   :  { %v623_v3 = vld [vmem:[#allocation6 + $0x18] sm:$0xff]  ;;  %v625_v4 = vld [vmem:[#allocation7] sm:$0xff]  ;;  %v627_v5 = vld [vmem:[#allocation7 + $0x8] sm:$0xff]  ;;  %v82_v6 = vmul.f32 %v617_v0, %v617_v0  ;;  %v83_v7 = vmul.f32 %v619_v1, %v619_v1  ;;  %v84_v8 = vmul.f32 %v621_v2, %v621_v2  ;;  %s734_s28 = sld [smem:[#allocation2 + $0x2]]  ;;  %s736_s10 = sld [smem:[#allocation2 + $0x3]] }
  0x44   :  { %v635_v9 = vld [vmem:[#allocation7 + $0x10] sm:$0xff]  ;;  %v637_v10 = vld [vmem:[#allocation7 + $0x18] sm:$0xff]  ;;  %v639_v11 = vld [vmem:[#allocation9] sm:$0xff]  ;;  %v95_v12 = vmul.f32 %v625_v4, %v625_v4  ;;  %v96_v13 = vmul.f32 %v627_v5, %v627_v5  ;;  %v85_v17 = vmul.f32 %v623_v3, %v623_v3  ;;  %v147_v33 = vmul.f32 %v625_v4, %v617_v0  ;;  %s741_s11 = sld [smem:[#allocation2 + $0x6]]  ;;  %s743_s12 = sld [smem:[#allocation2 + $0x7]] }
  0x45   :  { %v645_v14 = vld [vmem:[#allocation9 + $0x8] sm:$0xff]  ;;  %v647_v15 = vld [vmem:[#allocation9 + $0x10] sm:$0xff]  ;;  %v649_v16 = vld [vmem:[#allocation9 + $0x18] sm:$0xff]  ;;  %v86_v18 = vadd.f32 %v83_v7, %v82_v6  ;;  %v97_v19 = vmul.f32 %v635_v9, %v635_v9  ;;  %v108_v20 = vmul.f32 %v639_v11, %v639_v11  ;;  %v98_v21 = vmul.f32 %v637_v10, %v637_v10  ;;  %s747_s13 = sld [smem:[#allocation2 + $0x8]]  ;;  %s749_s14 = sld [smem:[#allocation2 + $0x9]] }
  0x46   :  { %v99_v22 = vadd.f32 %v96_v13, %v95_v12  ;;  %v109_v23 = vmul.f32 %v645_v14, %v645_v14  ;;  %v110_v24 = vmul.f32 %v647_v15, %v647_v15  ;;  %v111_v27 = vmul.f32 %v649_v16, %v649_v16  ;;  %s756_s2 = sld [smem:[#allocation2 + $0xa]]  ;;  %s758_s15 = sld [smem:[#allocation2 + $0xb]] }
  0x47   :  { %v87_v25 = vadd.f32 %v86_v18, %v84_v8  ;;  %v121_v36 = vmul.f32 %v639_v11, %v617_v0  ;;  %v122_v37 = vmul.f32 %v645_v14, %v619_v1  ;;  %v134_v39 = vmul.f32 %v639_v11, %v625_v4  ;;  %s765_s16 = sld [smem:[#allocation2 + $0xc]]  ;;  %s767_s17 = sld [smem:[#allocation2 + $0x1b]] }
  0x48   :  { %v100_v26 = vadd.f32 %v99_v22, %v97_v19  ;;  %v112_v28 = vadd.f32 %v109_v23, %v108_v20  ;;  %v135_v40 = vmul.f32 %v645_v14, %v627_v5  ;;  %v160_v41 = vsub.f32 %v617_v0, %v639_v11  ;;  %s771_s19 = sld [smem:[#allocation2 + $0xd]]  ;;  %s773_s20 = sld [smem:[#allocation2 + $0xf]] }
  0x49   :  { %v88_v29 = vadd.f32 %v87_v25, %v85_v17  ;;  %v148_v44 = vmul.f32 %v627_v5, %v619_v1  ;;  %v161_v45 = vsub.f32 %v619_v1, %v645_v14  ;;  %v162_v47 = vsub.f32 %v621_v2, %v647_v15  ;;  %s775_s21 = sld [smem:[#allocation2 + $0x13]]  ;;  %s777_s22 = sld [smem:[#allocation2 + $0xe]] }
  0x4a   :  { %v101_v30 = vadd.f32 %v100_v26, %v98_v21  ;;  %v113_v31 = vadd.f32 %v112_v28, %v110_v24  ;;  %v123_v50 = vmul.f32 %v647_v15, %v621_v2  ;;  %v125_v51 = vadd.f32 %v122_v37, %v121_v36  ;;  %s779_s0 = sld [smem:[#allocation2 + $0x14]]  ;;  %s781_s23 = sld [smem:[#allocation2 + $0x10]] }
  0x4b   :  { %v89_v32 = vrot.slane %v88_v29, 4  ;;  %v136_v53 = vmul.f32 %v647_v15, %v635_v9  ;;  %v138_v54 = vadd.f32 %v135_v40, %v134_v39  ;;  %v164_v55 = vand.u32 2147483647, %v160_v41  ;;  %s783_s24 = sld [smem:[#allocation2 + $0x11]]  ;;  %s785_s25 = sld [smem:[#allocation2 + $0x12]] }
  0x4c   :  { %v102_v34 = vrot.slane %v101_v30, 4  ;;  %v114_v35 = vadd.f32 %v113_v31, %v111_v27  ;;  %v149_v57 = vmul.f32 %v635_v9, %v621_v2  ;;  %v151_v58 = vadd.f32 %v148_v44, %v147_v33  ;;  %s787_s26 = sld [smem:[#allocation2 + $0x15]]  ;;  %s789_s29 = sld [smem:[#allocation2 + $0x16]] }
  0x4d   :  { %v90_v38 = vadd.f32 %v89_v32, %v88_v29  ;;  %v165_v59 = vand.u32 2147483647, %v161_v45  ;;  %v163_v61 = vsub.f32 %v623_v3, %v649_v16  ;;  %v166_v62 = vand.u32 2147483647, %v162_v47  ;;  %s791_s30 = sld [smem:[#allocation2 + $0x17]]  ;;  %s793_s5 = sld [smem:[#allocation2 + $0x18]] }
  0x4e   :  { %v103_v42 = vadd.f32 %v102_v34, %v101_v30  ;;  %v115_v43 = vrot.slane %v114_v35, 4  ;;  %v124_v63 = vmul.f32 %v649_v16, %v623_v3  ;;  %v137_v6 = vmul.f32 %v649_v16, %v637_v10  ;;  %s795_s6 = sld [smem:[#allocation2 + $0x19]]  ;;  %s824_s7 = sld [smem:[#allocation2 + $0x1a]] }
  0x4f   :  { %v91_v46 = vrot.slane %v90_v38, 2  ;;  %v126_v12 = vadd.f32 %v125_v51, %v123_v50  ;;  %v168_v13 = vadd.f32 %v165_v59, %v164_v55  ;;  %v139_v17 = vadd.f32 %v138_v54, %v136_v53  ;;  %s831_s8 = sld [smem:[#allocation2 + $0x4]]  ;;  %s833_s9 = sld [smem:[#allocation2 + $0x5]] }
  0x50   :  { %v104_v48 = vrot.slane %v103_v42, 2  ;;  %v116_v49 = vadd.f32 %v115_v43, %v114_v35  ;;  %v150_v18 = vmul.f32 %v637_v10, %v623_v3  ;;  %v152_v19 = vadd.f32 %v151_v58, %v149_v57  ;;  %s534_s1 = smov [#allocation10]  }
  0x51   :  { %v92_v52 = vadd.f32 %v91_v46, %v90_v38  ;;  %v177_v20 = vsub.f32 %v625_v4, %v639_v11  ;;  %v167_v22 = vand.u32 2147483647, %v163_v61  ;;  %v169_v23 = vadd.f32 %v168_v13, %v166_v62  ;;  %s365_s18 = sshll.u32 %s534_s1, 4  ;;  %s366_s18 = int_to_ptr.vmem [resolvable:$true] %s365_s18 }
  0x52   :  { %v117_v56 = vrot.slane %v116_v49, 2  ;;  %v105_v60 = vadd.f32 %v104_v48, %v103_v42  ;;  %v178_v24 = vsub.f32 %v627_v5, %v645_v14  ;;  %v179_v25 = vsub.f32 %v635_v9, %v647_v15  ;;  %p503_p0 = scmp.lt.s32.totalorder %s366_s18, %s366_s18 }
  0x53   :  { %v93_v7 = vrot.slane %v92_v52, 1  ;;  %v180_v26 = vsub.f32 %v637_v10, %v649_v16  ;;  %v127_v29 = vadd.f32 %v126_v12, %v124_v63  ;;  %v181_v30 = vand.u32 2147483647, %v177_v20 }
  0x54   :  { %v118_v8 = vadd.f32 %v117_v56, %v116_v49  ;;  %v106_v21 = vrot.slane %v105_v60, 1  ;;  %v140_v31 = vadd.f32 %v139_v17, %v137_v6  ;;  %v182_v32 = vand.u32 2147483647, %v178_v24 }
  0x55   :  { %v705_v27 = vadd.f32 %v93_v7, %v92_v52  ;;  %v183_v11 = vand.u32 2147483647, %v179_v25  ;;  %v194_v33 = vsub.f32 %v617_v0, %v625_v4  ;;  %v153_v14 = vadd.f32 %v152_v19, %v150_v18 }
  0x56   :  { %v119_v28 = vrot.slane %v118_v8, 1  ;;  %v709_v34 = vadd.f32 %v106_v21, %v105_v60  ;;  %v170_v35 = vadd.f32 %v169_v23, %v167_v22  ;;  %v195_v15 = vsub.f32 %v619_v1, %v627_v5 }
  0x57   :  { %v184_v36 = vand.u32 2147483647, %v180_v26  ;;  %v185_v16 = vadd.f32 %v182_v32, %v181_v30  ;;  %v196_v37 = vsub.f32 %v621_v2, %v635_v9  ;;  %v197_v38 = vsub.f32 %v623_v3, %v637_v10 }
  0x58   :  { %v717_v39 = vadd.f32 %v119_v28, %v118_v8  ;;  %v198_v40 = vand.u32 2147483647, %v194_v33  ;;  %v199_v41 = vand.u32 2147483647, %v195_v15  ;;  %410 = vrsqrt.f32 %v705_v27 }
  0x59   :  { %v186_v0 = vadd.f32 %v185_v16, %v183_v11  ;;  %v200_v4 = vand.u32 2147483647, %v196_v37  ;;  %v128_v42 = vrot.slane %v127_v29, 4  ;;  %v201_v43 = vand.u32 2147483647, %v197_v38 }
  0x5a   :  { %v202_v44 = vadd.f32 %v199_v41, %v198_v40  ;;  %v141_v1 = vrot.slane %v140_v31, 4  ;;  %v171_v5 = vrot.slane %v170_v35, 4  ;;  %412 = vrsqrt.f32 %v709_v34 }
  0x5b   :  { %v187_v45 = vadd.f32 %v186_v0, %v184_v36  ;;  %v154_v2 = vrot.slane %v153_v14, 4  ;;  %414 = vrsqrt.f32 %v717_v39  ;;  %v129_v46 = vadd.f32 %v128_v42, %v127_v29 }
  0x5c   :  { %v203_v9 = vadd.f32 %v202_v44, %v200_v4  ;;  %v142_v47 = vadd.f32 %v141_v1, %v140_v31  ;;  %v172_v48 = vadd.f32 %v171_v5, %v170_v35  ;;  %vm241_vm0 = vcmp.eq.f32.partialorder %v705_v27, inf }
  0x5d   :  { %v188_v3 = vrot.slane %v187_v45, 4  ;;  %v155_v49 = vadd.f32 %v154_v2, %v153_v14  ;;  %v130_v53 = vrot.slane %v129_v46, 2  ;;  %vm243_vm1 = vcmp.eq.f32.partialorder %v705_v27, 0.0 }
  0x5e   :  { %v204_v10 = vadd.f32 %v203_v9, %v201_v43  ;;  %v143_v54 = vrot.slane %v142_v47, 2  ;;  %v173_v55 = vrot.slane %v172_v48, 2  ;;  %v244_v58 = vand.u32 2147483648, %v705_v27 }
  0x5f   :  { %v189_v50 = vadd.f32 %v188_v3, %v187_v45  ;;  %v156_v57 = vrot.slane %v155_v49, 2  ;;  %vm248_vm2 = vcmp.eq.f32.partialorder %v709_v34, inf  ;;  %vm250_vm3 = vcmp.eq.f32.partialorder %v709_v34, 0.0 }
  0x60   :  { %v205_v52 = vrot.slane %v204_v10, 4  ;;  %v251_v62 = vand.u32 2147483648, %v709_v34  ;;  %vm255_vm4 = vcmp.eq.f32.partialorder %v717_v39, inf  ;;  %v258_v8 = vand.u32 2147483648, %v717_v39 }
  0x61   :  { %v190_v60 = vrot.slane %v189_v50, 2  ;;  %v174_v12 = vadd.f32 %v173_v55, %v172_v48  ;;  %vm257_vm5 = vcmp.eq.f32.partialorder %v717_v39, 0.0  ;;  %v131_v17 = vadd.f32 %v130_v53, %v129_v46 }
  0x62   :  { %v411_v51 = vpop.eup %410  ;;  %v206_v6 = vadd.f32 %v205_v52, %v204_v10  ;;  %v144_v20 = vadd.f32 %v143_v54, %v142_v47  ;;  %v157_v24 = vadd.f32 %v156_v57, %v155_v49  ;;  %v275_v41 = vstv %s767_s17 }
  0x63   :  { %v240_v56 = vmul.f32 %v411_v51, %v705_v27  ;;  %v191_v21 = vadd.f32 %v190_v60, %v189_v50  ;;  %v175_v28 = vrot.slane %v174_v12, 1  ;;  %v132_v31 = vrot.slane %v131_v17, 1 }
  0x64   :  { %v413_v59 = vpop.eup %412  ;;  %v207_v25 = vrot.slane %v206_v6, 2  ;;  %v145_v11 = vrot.slane %v144_v20, 1  ;;  %v158_v35 = vrot.slane %v157_v24, 1  ;;  %v277_v0 = vstv %s741_s11 }
  0x65   :  { %v242_v61 = vsel %vm241_vm0, %v705_v27, %v240_v56  ;;  %v415_v63 = vpop.eup %414  ;;  %v247_v7 = vmul.f32 %v413_v59, %v709_v34  ;;  %v192_v33 = vrot.slane %v191_v21, 1  ;;  %v176_v36 = vadd.f32 %v175_v28, %v174_v12 }
  0x66   :  { %v254_v13 = vmul.f32 %v415_v63, %v717_v39  ;;  %v245_v18 = vsel %vm243_vm1, %v244_v58, %v242_v61  ;;  %v208_v15 = vadd.f32 %v207_v25, %v206_v6  ;;  %v133_v16 = vadd.f32 %v132_v31, %v131_v17 }
  0x67   :  { %v249_v19 = vsel %vm248_vm2, %v709_v34, %v247_v7  ;;  %v146_v37 = vadd.f32 %v145_v11, %v144_v20  ;;  %v193_v38 = vadd.f32 %v192_v33, %v191_v21  ;;  %v799_v4 = vmul.f32 0.03125, %v176_v36 }
  0x68   :  { %v252_v22 = vsel %vm250_vm3, %v251_v62, %v249_v19  ;;  %v256_v23 = vsel %vm255_vm4, %v717_v39, %v254_v13  ;;  %v159_v39 = vadd.f32 %v158_v35, %v157_v24  ;;  %v209_v40 = vrot.slane %v208_v15, 1 }
  0x69   :  { %v259_v26 = vsel %vm257_vm5, %v258_v8, %v256_v23  ;;  %v268_v27 = vmul.f32 %v252_v22, %v245_v18  ;;  %v279_v42 = vstv %s724_s3  ;;  %v283_v43 = vstv %s743_s12  ;;  %s498_s3 = scalar_lea.vmem %s366_s18, 16 }
  0x6a   :  { %v260_v29 = vmul.f32 %v259_v26, %v245_v18  ;;  %v264_v30 = vmul.f32 %v259_v26, %v252_v22  ;;  %v285_v44 = vstv %s747_s13  ;;  %v288_v1 = vstv %s729_s27  ;;  %p499_p13 = scmp.ne.s32.totalorder %s366_s18, %s498_s3  ;;  %s502_s27 = scalar_lea.vmem %s366_s18, 32 }
  0x6b   :  { %v269_v32 = vadd.f32 1e-06, %v268_v27  ;;  %v292_v5 = vstv %s749_s14  ;;  %v294_v45 = vstv %s756_s2  ;;  %v312_v2 = vstv %s773_s20  ;;  %p504_p1 = scmp.lt.s32.totalorder %s502_s27, %s498_s3 }
  0x6c   :  { %v261_v34 = vadd.f32 1e-06, %v260_v29  ;;  %v265_v14 = vadd.f32 1e-06, %v264_v30  ;;  %v808_v9 = vmul.f32 0.03125, %v193_v38  ;;  %v297_v3 = vstv %s758_s15 }
  0x6d   :  { %416 = vrcp.f32 %v269_v32  ;;  %v300_v10 = vstv %s734_s28  ;;  %v327_v46 = vstv %s775_s21  ;;  %v210_v47 = vadd.f32 %v209_v40, %v208_v15  ;;  %p505_p2 = por %p504_p1, %p503_p0 }
  0x6e   :  { %418 = vrcp.f32 %v261_v34  ;;  %v304_v48 = vstv %s765_s16  ;;  %v306_v49 = vstv %s771_s19  ;;  %v330_v50 = vstv %s779_s0 }
  0x6f   :  { %420 = vrcp.f32 %v265_v14  ;;  %v309_v51 = vstv %s777_s22  ;;  %v313_v52 = vmul.f32 %v312_v2, %v799_v4  ;;  %v315_v53 = vstv %s736_s10  ;;  %p506_p3 = pnand %p505_p2, %p499_p13 }
  0x70   :  { %v319_v54 = vstv %s781_s23  ;;  %v321_v56 = vstv %s783_s24  ;;  %v324_v57 = vstv %s785_s25  ;;  %v328_v58 = vmul.f32 %v327_v46, %v799_v4 }
  0x71   :  { %v337_v59 = vstv %s787_s26  ;;  %v331_v62 = vmul.f32 %v330_v50, %v808_v9  ;;  %v339_v63 = vstv %s789_s29  ;;  %v342_v6 = vstv %s791_s30 }
  0x72   :  { %v274_v12 = vmul.f32 0.03125, %v210_v47  ;;  %v345_v13 = vstv %s793_s5  ;;  %v348_v17 = vstv %s795_s6 }
  0x77   :  { %v417_v55 = vpop.eup %416 }
  0x78   :  { %v419_v60 = vpop.eup %418  ;;  %v271_v61 = vmul.f32 %v417_v55, %v159_v39 }
  0x79   :  { %v421_v7 = vpop.eup %420  ;;  %v263_v8 = vmul.f32 %v419_v60, %v133_v16 }
  0x7a   :  { %v267_v18 = vmul.f32 %v421_v7, %v146_v37  ;;  %v298_v19 = vmul.f32 %v297_v3, %v271_v61  ;;  %v310_v20 = vmul.f32 %v309_v51, %v271_v61  ;;  %v325_v21 = vmul.f32 %v324_v57, %v271_v61 }
  0x7b   :  { %v278_v22 = vmul.f32 %v277_v0, %v263_v8  ;;  %v284_v23 = vmul.f32 %v283_v43, %v263_v8  ;;  %v293_v24 = vmul.f32 %v292_v5, %v263_v8  ;;  %v305_v25 = vmul.f32 %v304_v48, %v263_v8 }
  0x7c   :  { %v286_v26 = vmul.f32 %v285_v44, %v267_v18  ;;  %v295_v27 = vmul.f32 %v294_v45, %v267_v18  ;;  %v307_v28 = vmul.f32 %v306_v49, %v267_v18  ;;  %v320_v29 = vmul.f32 %v319_v54, %v263_v8 }
  0x7d   :  { %v280_v30 = vadd.f32 %v279_v42, %v278_v22  ;;  %v322_v31 = vmul.f32 %v321_v56, %v267_v18  ;;  %v338_v32 = vmul.f32 %v337_v59, %v263_v8  ;;  %v340_v11 = vmul.f32 %v339_v63, %v267_v18 }
  0x7e   :  { %v287_v33 = vadd.f32 %v286_v26, %v284_v23  ;;  %v296_v34 = vadd.f32 %v295_v27, %v293_v24  ;;  %v308_v14 = vadd.f32 %v307_v28, %v305_v25  ;;  %v343_v35 = vmul.f32 %v342_v6, %v271_v61 }
  0x7f   :  { %v281_v15 = vmul.f32 %v280_v30, %v263_v8  ;;  %v323_v36 = vadd.f32 %v322_v31, %v320_v29  ;;  %v341_v16 = vadd.f32 %v340_v11, %v338_v32  ;;  %v346_v37 = vmul.f32 %v345_v13, %v799_v4 }
  0x80   :  { %v289_v38 = vadd.f32 %v288_v1, %v287_v33  ;;  %v299_v39 = vadd.f32 %v298_v19, %v296_v34  ;;  %v311_v40 = vadd.f32 %v310_v20, %v308_v14  ;;  %v351_v0 = vstv %s824_s7 }
  0x81   :  { %v282_v42 = vadd.f32 %v281_v15, %v275_v41  ;;  %v326_v43 = vadd.f32 %v325_v21, %v323_v36  ;;  %v344_v44 = vadd.f32 %v343_v35, %v341_v16  ;;  %v349_v5 = vmul.f32 %v348_v17, %v808_v9 }
  0x82   :  { %v290_v45 = vmul.f32 %v289_v38, %v267_v18  ;;  %v301_v2 = vadd.f32 %v300_v10, %v299_v39  ;;  %v314_v3 = vadd.f32 %v313_v52, %v311_v40  ;;  %v352_v48 = vmul.f32 %v351_v0, %v274_v12 }
  0x83   :  { %v329_v46 = vadd.f32 %v328_v58, %v326_v43  ;;  %v347_v47 = vadd.f32 %v346_v37, %v344_v44  ;;  %v333_v51 = vstv %s831_s8  ;;  %v354_v57 = vstv %s833_s9 }
  0x84   :  { %v291_v49 = vadd.f32 %v290_v45, %v282_v42  ;;  %v302_v50 = vmul.f32 %v301_v2, %v271_v61  ;;  %v316_v1 = vadd.f32 %v315_v53, %v314_v3 }
  0x85   :  { %v332_v54 = vadd.f32 %v331_v62, %v329_v46  ;;  %v350_v55 = vadd.f32 %v349_v5, %v347_v47 }
  0x86   :  { %v303_v56 = vadd.f32 %v302_v50, %v291_v49  ;;  %v317_v41 = vmul.f32 %v316_v1, %v799_v4 }
  0x87   :  { %v334_v59 = vadd.f32 %v333_v51, %v332_v54  ;;  %v353_v60 = vadd.f32 %v352_v48, %v350_v55 }
  0x88   :  { %v318_v63 = vadd.f32 %v317_v41, %v303_v56 }
  0x89   :  { %v335_v6 = vmul.f32 %v334_v59, %v808_v9  ;;  %v355_v10 = vadd.f32 %v354_v57, %v353_v60 }
  0x8b   :  { %v336_v52 = vadd.f32 %v335_v6, %v318_v63  ;;  %v356_v58 = vmul.f32 %v355_v10, %v274_v12 }
  0x8d   :  { %v357_v7 = vadd.f32 %v356_v58, %v336_v52 }
  0x8f   :  { %358 = vst [vmem:[#allocation10] sm:$0x1] %v357_v7 }
  0x90   :  { %509 = shalt.err (!%p506_p3)
}
  0x91   :  { %s510_s11 = scalar_lea.hbm %s860_s4, 16 }
  0x92   :  { %p511_p4 = scmp.ne.s32.totalorder %s860_s4, %s510_s11  ;;  %p514_p5 = scmp.lt.u32.totalorder %s510_s11, %s860_s4 }
  0x94   :  { %p516_p6 = pnand %p514_p5, %p511_p4 }
  0x96   :  { %519 = shalt.err (!%p516_p6)
}
  0x97   :  { %368 = dma.vmem_to_hbm [thread:$0]  %s366_s18, 16, %s860_s4, [#allocation4]  }
  0x98   :  { %526 = dma.done.wait [#allocation4], 16  }
  0x99   :  { %527 = vsyncadd [#allocation4], 4294967280 }
  0x9a   :  { %372 = vsyncpa [#allocation3], 1 }
  0x9b   :  { %373 = vsyncpa [#allocation8], 1 }
  0x9c   :  { %374 = vsyncpa [#allocation4], 1 }
  0x9d   :  { %375 = vsyncpa [#allocation5], 1 }

</bundles_post_ra>
